<compile_context>
chip_gen: v6e
topology: v6e:2x2x1
jax: 0.10.0
libtpu: 0.0.40
codegen_flags: <defaults>
</compile_context>

<pallas_src>
import functools

import jax
import jax.numpy as jnp
from jax.experimental import pallas as pl
from jax.experimental.pallas import tpu as pltpu

LANE = 128
LN_EPS = 1e-5


# ----------------------------------------------------------------------------
# Helpers
# ----------------------------------------------------------------------------
def _round_up(v, m):
    return ((v + m - 1) // m) * m


def _vmem_budget_bytes():
    """Generation-aware scoped-VMEM budget (~75% of per-core VMEM, <= 96 MiB)."""
    cap = 128 << 20
    try:
        cap = int(getattr(pltpu.get_tpu_info(), "vmem_capacity_bytes", cap))
    except Exception:
        pass
    return min((cap * 3) // 4, 96 << 20)   # v7x: ~48 MiB, v5e/v6e: 96 MiB


def _masked_layernorm(h, gamma, beta, hidden, eps):
    """LayerNorm over the first `hidden` lanes of a lane-padded f32 tile."""
    mask = jax.lax.broadcasted_iota(jnp.int32, h.shape, 1) < hidden
    inv_h = 1.0 / hidden
    mean = jnp.sum(jnp.where(mask, h, 0.0), axis=-1, keepdims=True) * inv_h
    centered = jnp.where(mask, h - mean, 0.0)
    var = jnp.sum(centered * centered, axis=-1, keepdims=True) * inv_h
    inv = jax.lax.rsqrt(var + eps)   # EUP slot
    return centered * inv * gamma + beta


def _pick_tile(n, preferred, unit):
    """Largest t <= preferred with t % unit == 0 and n % t == 0 (n % unit == 0)."""
    t = max((min(preferred, n) // unit) * unit, unit)
    while t > unit:
        if n % t == 0:
            return t
        t -= unit
    return unit


def _choose_tiles(np_, hp, adj_bytes, budget, tm_req, tk_req):
    # Row tile: keep >= 2 row blocks so the 'parallel' axis can still split
    # across both TensorCores on v7x megacore.
    tm_pref = tm_req if tm_req is not None else 1024
    tm_pref = min(tm_pref, max(np_ // 2, 8))
    tm = _pick_tile(np_, tm_pref, 8)

    # K tile: as big as the double-buffered adj tile allows within the budget.
    fixed = 2 * tm * hp * 4 + tm * hp * 4 + (4 << 20)   # out dbl-buf + acc + headroom
    per_tk = 2 * tm * adj_bytes + 2 * hp * 4            # adj dbl-buf + x dbl-buf (worst case)
    tk_cap = max((budget - fixed) // per_tk, 128)
    tk_pref = tk_req if tk_req is not None else 8192
    tk_pref = min(tk_pref, tk_cap, np_)
    tk = _pick_tile(np_, tk_pref, 128)
    return tm, tk


# ----------------------------------------------------------------------------
# Kernels
# ----------------------------------------------------------------------------
def _fused_small_kernel(adj_ref, x_ref, w1_ref, b1_ref, w2_ref, b2_ref,
                        gamma_ref, beta_ref, out_ref, *, hidden, eps):
    """Resident-Ahat fast path: both GCN hops + ReLU + LayerNorm in one call."""
    adj = adj_ref[...]
    msg1 = jnp.dot(x_ref[...], w1_ref[...],
                   preferred_element_type=jnp.float32).astype(adj.dtype)
    h1 = jnp.maximum(
        jnp.dot(adj, msg1, preferred_element_type=jnp.float32) + b1_ref[...], 0.0)
    # dropout(p=0.5): eval-mode identity.
    msg2 = jnp.dot(h1.astype(w2_ref.dtype), w2_ref[...],
                   preferred_element_type=jnp.float32).astype(adj.dtype)
    h2 = jnp.dot(adj, msg2, preferred_element_type=jnp.float32) + b2_ref[...]
    out_ref[...] = _masked_layernorm(h2, gamma_ref[...], beta_ref[...],
                                     hidden, eps).astype(out_ref.dtype)


def _fused_hop_relu_kernel(adj_ref, x_ref, w_ref, b_ref, out_ref, acc_ref):
    """h1 = relu(Ahat @ (x @ W) + b); Ahat streamed in (tm, tk) tiles over k.

    The (tk, hp) msg tile is computed on the fly from the narrow x k-tile and
    the resident W; f32 scratch accumulation (output may be bf16)."""
    k = pl.program_id(1)

    @pl.when(k == 0)
    def _():
        acc_ref[...] = jnp.zeros_like(acc_ref)

    msg = jnp.dot(x_ref[...], w_ref[...].astype(x_ref.dtype),
                  preferred_element_type=jnp.float32).astype(adj_ref.dtype)
    acc_ref[...] += jnp.dot(adj_ref[...], msg, preferred_element_type=jnp.float32)

    @pl.when(k == pl.num_programs(1) - 1)
    def _():
        out_ref[...] = jnp.maximum(acc_ref[...] + b_ref[...], 0.0).astype(out_ref.dtype)


def _fused_hop_ln_kernel(adj_ref, x_ref, w_ref, b_ref, gamma_ref, beta_ref,
                         out_ref, *, hidden, eps):
    """out = LayerNorm(Ahat @ (h1 @ W) + b); accumulates directly into the
    VMEM-resident f32 output block (constant block index across k), no scratch."""
    k = pl.program_id(1)

    @pl.when(k == 0)
    def _():
        out_ref[...] = jnp.zeros_like(out_ref)

    msg = jnp.dot(x_ref[...], w_ref[...].astype(x_ref.dtype),
                  preferred_element_type=jnp.float32).astype(adj_ref.dtype)
    out_ref[...] += jnp.dot(adj_ref[...], msg, preferred_element_type=jnp.float32)

    @pl.when(k == pl.num_programs(1) - 1)
    def _():
        h = out_ref[...] + b_ref[...]
        out_ref[...] = _masked_layernorm(h, gamma_ref[...], beta_ref[...],
                                         hidden, eps).astype(out_ref.dtype)


# ----------------------------------------------------------------------------
# pallas_call wrappers
# ----------------------------------------------------------------------------
def _fused_small(adj_c, x, w1p, b1p, w2p, b2p, gp, bp, *, hidden, budget):
    n, fin = x.shape
    hp = w1p.shape[1]

    def full(shape):
        return pl.BlockSpec(shape, lambda i, _s=shape: (0,) * len(_s))

    kernel = functools.partial(_fused_small_kernel, hidden=hidden, eps=LN_EPS)
    return pl.pallas_call(
        kernel,
        out_shape=jax.ShapeDtypeStruct((n, hp), jnp.float32),
        grid_spec=pltpu.PrefetchScalarGridSpec(
            num_scalar_prefetch=0,
            grid=(1,),
            in_specs=[full((n, n)), full((n, fin)), full((fin, hp)), full((1, hp)),
                      full((hp, hp)), full((1, hp)), full((1, hp)), full((1, hp))],
            out_specs=full((n, hp)),
        ),
        compiler_params=pltpu.CompilerParams(
            dimension_semantics=("arbitrary",),
            vmem_limit_bytes=int(budget)),
    )(adj_c, x, w1p, b1p, w2p, b2p, gp, bp)


def _fused_hop(adj, x, w, b, gamma, beta, *, hidden, tm, tk, out_dtype, budget):
    np_ = adj.shape[0]
    hp = w.shape[1]
    fin = x.shape[1]
    grid = (np_ // tm, np_ // tk)

    adj_spec = pl.BlockSpec((tm, tk), lambda i, k: (i, k))
    x_spec = pl.BlockSpec((tk, fin), lambda i, k: (k, 0))
    w_spec = pl.BlockSpec((fin, hp), lambda i, k: (0, 0))
    vec_spec = pl.BlockSpec((1, hp), lambda i, k: (0, 0))
    out_spec = pl.BlockSpec((tm, hp), lambda i, k: (i, 0))

    adj_b = jnp.dtype(adj.dtype).itemsize
    x_b = jnp.dtype(x.dtype).itemsize
    cost = pl.CostEstimate(
        flops=int(2 * np_ * np_ * hp + 2 * np_ * fin * hp * (np_ // tm)),
        transcendentals=int(np_ if gamma is not None else 0),
        bytes_accessed=int(np_ * np_ * adj_b + (np_ // tm) * np_ * fin * x_b
                           + np_ * hp * jnp.dtype(out_dtype).itemsize),
    )
    cparams = pltpu.CompilerParams(
        dimension_semantics=("parallel", "arbitrary"),
        vmem_limit_bytes=int(budget),
    )

    if gamma is None:
        return pl.pallas_call(
            _fused_hop_relu_kernel,
            out_shape=jax.ShapeDtypeStruct((np_, hp), out_dtype),
            grid_spec=pltpu.PrefetchScalarGridSpec(
                num_scalar_prefetch=0,
                grid=grid,
                in_specs=[adj_spec, x_spec, w_spec, vec_spec],
                out_specs=out_spec,
                scratch_shapes=[pltpu.VMEM((tm, hp), jnp.float32)]),
            compiler_params=cparams,
            cost_estimate=cost,
        )(adj, x, w, b)

    kernel = functools.partial(_fused_hop_ln_kernel, hidden=hidden, eps=LN_EPS)
    return pl.pallas_call(
        kernel,
        out_shape=jax.ShapeDtypeStruct((np_, hp), jnp.float32),
        grid_spec=pltpu.PrefetchScalarGridSpec(
            num_scalar_prefetch=0,
            grid=grid,
            in_specs=[adj_spec, x_spec, w_spec, vec_spec, vec_spec, vec_spec],
            out_specs=out_spec),
        compiler_params=cparams,
        cost_estimate=cost,
    )(adj, x, w, b, gamma, beta)


# ----------------------------------------------------------------------------
# Forward pass
# ----------------------------------------------------------------------------
def dynamic_gc_forward(adj_norm, x, w1, b1, w2, b2, gamma, beta, *,
                       compute_dtype=jnp.bfloat16, tm=None, tk=None,
                       force_stream=False):
    """DynamicGC (gcn) forward: relu(Ahat x W1 + b1) -> Ahat h W2 + b2 -> LayerNorm."""
    n, fin = x.shape
    hidden = w1.shape[1]
    hp = _round_up(hidden, LANE)             # lane-dense padded hidden width
    budget = _vmem_budget_bytes()

    def pad_cols(a):
        a = a.reshape(1, -1).astype(jnp.float32) if a.ndim == 1 else a.astype(jnp.float32)
        return jnp.pad(a, ((0, 0), (0, hp - a.shape[1])))

    w1p = jnp.pad(w1.astype(jnp.float32), ((0, 0), (0, hp - hidden)))
    w2p = jnp.pad(w2.astype(jnp.float32), ((0, hp - hidden), (0, hp - hidden)))
    b1p, b2p = pad_cols(b1), pad_cols(b2)
    gp, bp = pad_cols(gamma), pad_cols(beta)

    adj_b = jnp.dtype(compute_dtype).itemsize
    xf = x.astype(jnp.float32)

    # ---- Fast path: whole problem resident in VMEM, single fused pallas_call.
    fast_bytes = 2 * n * n * adj_b + 2 * n * fin * 4 + 8 * n * hp * 4 + (4 << 20)
    if (not force_stream) and fast_bytes <= budget:
        out_p = _fused_small(adj_norm.astype(compute_dtype), xf,
                             w1p, b1p, w2p, b2p, gp, bp,
                             hidden=hidden, budget=budget)
        return out_p[:, :hidden]

    # ---- Streaming path: Ahat streamed twice in large (tm, tk) tiles.
    np_ = _round_up(n, 256)                  # pad N so large tiles always divide
    tm, tk = _choose_tiles(np_, hp, adj_b, budget, tm, tk)
    adj_p, xp = adj_norm, xf
    if np_ != n:
        adj_p = jnp.pad(adj_norm, ((0, np_ - n), (0, np_ - n)))
        xp = jnp.pad(xf, ((0, np_ - n), (0, 0)))
    adj_c = adj_p.astype(compute_dtype)

    # Hop 1: h1 = relu(Ahat @ (x @ W1) + b1), emitted in compute_dtype.
    h1 = _fused_hop(adj_c, xp, w1p, b1p, None, None, hidden=hidden,
                    tm=tm, tk=tk, out_dtype=compute_dtype, budget=budget)
    # dropout(p=0.5): eval-mode identity.
    # Hop 2: out = LayerNorm(Ahat @ (h1 @ W2) + b2).
    out_p = _fused_hop(adj_c, h1, w2p, b2p, gp, bp, hidden=hidden,
                       tm=tm, tk=tk, out_dtype=jnp.float32, budget=budget)
    return out_p[:n, :hidden]


def build_normalized_adj(n):
    """Deterministic ring graph + self loops, DGL 'both' normalization."""
    idx = jnp.arange(n)
    a = jnp.zeros((n, n), jnp.float32)
    a = a.at[idx, (idx + 1) % n].set(1.0)
    a = a.at[(idx + 1) % n, idx].set(1.0)
    a = a + jnp.eye(n, dtype=jnp.float32)
    deg = jnp.sum(a, axis=1)
    d_inv_sqrt = 1.0 / jnp.sqrt(deg)
    return a * d_inv_sqrt[:, None] * d_inv_sqrt[None, :]


if __name__ == "__main__":
    N, IN_FEATS, HIDDEN = 256, 8, 32

    key = jax.random.PRNGKey(0)
    kx, k1, k2 = jax.random.split(key, 3)

    x = jax.random.normal(kx, (N, IN_FEATS), dtype=jnp.float32)
    adj_norm = build_normalized_adj(N)

    w1 = jax.random.normal(k1, (IN_FEATS, HIDDEN), jnp.float32) * (1.0 / jnp.sqrt(IN_FEATS))
    b1 = jnp.zeros((HIDDEN,), jnp.float32)
    w2 = jax.random.normal(k2, (HIDDEN, HIDDEN), jnp.float32) * (1.0 / jnp.sqrt(HIDDEN))
    b2 = jnp.zeros((HIDDEN,), jnp.float32)
    gamma = jnp.ones((HIDDEN,), jnp.float32)
    beta = jnp.zeros((HIDDEN,), jnp.float32)

    # Pure-JAX f32 reference.
    with jax.default_matmul_precision("highest"):
        h1 = jnp.maximum(adj_norm @ (x @ w1) + b1, 0.0)
        h2 = adj_norm @ (h1 @ w2) + b2
    mu = h2.mean(-1, keepdims=True)
    var = ((h2 - mu) ** 2).mean(-1, keepdims=True)
    ref = (h2 - mu) / jnp.sqrt(var + LN_EPS) * gamma + beta

    # Resident-Ahat fast path: f32 (tight check) and bf16 (perf default, loose).
    out_fast_f32 = dynamic_gc_forward(adj_norm, x, w1, b1, w2, b2, gamma, beta,
                                      compute_dtype=jnp.float32)
    jax.block_until_ready(out_fast_f32)
    assert jnp.allclose(out_fast_f32, ref, atol=1e-3, rtol=1e-3), "fast f32 mismatch"

    out_fast_bf16 = dynamic_gc_forward(adj_norm, x, w1, b1, w2, b2, gamma, beta,
                                       compute_dtype=jnp.bfloat16)
    jax.block_until_ready(out_fast_bf16)
    assert jnp.allclose(out_fast_bf16, ref, atol=1.5e-1, rtol=1.5e-1), "fast bf16 mismatch"

    # Streaming path (forced), tm=tk=128 exercises a 2x2 (row, k) grid.
    out_s_f32 = dynamic_gc_forward(adj_norm, x, w1, b1, w2, b2, gamma, beta,
                                   compute_dtype=jnp.float32, tm=128, tk=128,
                                   force_stream=True)
    jax.block_until_ready(out_s_f32)
    assert jnp.allclose(out_s_f32, ref, atol=1e-3, rtol=1e-3), "stream f32 mismatch"

    out_s_bf16 = dynamic_gc_forward(adj_norm, x, w1, b1, w2, b2, gamma, beta,
                                    compute_dtype=jnp.bfloat16, tm=128, tk=128,
                                    force_stream=True)
    jax.block_until_ready(out_s_bf16)
    assert jnp.allclose(out_s_bf16, ref, atol=1.5e-1, rtol=1.5e-1), "stream bf16 mismatch"

    print("KERNEL_OK")
</pallas_src>

<mosaic_0001>
module attributes {stable_mosaic.version = 11 : i64} {
  func.func @_fused_small_kernel(%arg0: i32, %arg1: memref<256x256xf32, #tpu.memory_space<vmem>>, %arg2: memref<256x8xf32, #tpu.memory_space<vmem>>, %arg3: memref<8x128xf32, #tpu.memory_space<vmem>>, %arg4: memref<1x128xf32, #tpu.memory_space<vmem>>, %arg5: memref<128x128xf32, #tpu.memory_space<vmem>>, %arg6: memref<1x128xf32, #tpu.memory_space<vmem>>, %arg7: memref<1x128xf32, #tpu.memory_space<vmem>>, %arg8: memref<1x128xf32, #tpu.memory_space<vmem>>, %arg9: memref<256x128xf32, #tpu.memory_space<vmem>>) attributes {dimension_semantics = [#tpu.dimension_semantics<arbitrary>], iteration_bounds = array<i64: 1>, scalar_prefetch = 0 : i64, scratch_operands = 0 : i64, tpu.core_type = #tpu.core_type<tc>, window_params = [{pipeline_mode = #tpu.pipeline_mode<synchronous>, transform_indices = @transform_0, window_bounds = array<i64: 256, 256>}, {pipeline_mode = #tpu.pipeline_mode<synchronous>, transform_indices = @transform_1, window_bounds = array<i64: 256, 8>}, {pipeline_mode = #tpu.pipeline_mode<synchronous>, transform_indices = @transform_2, window_bounds = array<i64: 8, 128>}, {pipeline_mode = #tpu.pipeline_mode<synchronous>, transform_indices = @transform_3, window_bounds = array<i64: 1, 128>}, {pipeline_mode = #tpu.pipeline_mode<synchronous>, transform_indices = @transform_4, window_bounds = array<i64: 128, 128>}, {pipeline_mode = #tpu.pipeline_mode<synchronous>, transform_indices = @transform_5, window_bounds = array<i64: 1, 128>}, {pipeline_mode = #tpu.pipeline_mode<synchronous>, transform_indices = @transform_6, window_bounds = array<i64: 1, 128>}, {pipeline_mode = #tpu.pipeline_mode<synchronous>, transform_indices = @transform_7, window_bounds = array<i64: 1, 128>}, {pipeline_mode = #tpu.pipeline_mode<synchronous>, transform_indices = @transform_8, window_bounds = array<i64: 256, 128>}]} {
    %c0 = arith.constant 0 : index
    %c0_0 = arith.constant 0 : index
    %0 = vector.load %arg1[%c0, %c0_0] : memref<256x256xf32, #tpu.memory_space<vmem>>, vector<256x256xf32>
    %c0_1 = arith.constant 0 : index
    %c0_2 = arith.constant 0 : index
    %1 = vector.load %arg2[%c0_1, %c0_2] : memref<256x8xf32, #tpu.memory_space<vmem>>, vector<256x8xf32>
    %c0_3 = arith.constant 0 : index
    %c0_4 = arith.constant 0 : index
    %2 = vector.load %arg3[%c0_3, %c0_4] : memref<8x128xf32, #tpu.memory_space<vmem>>, vector<8x128xf32>
    %cst = arith.constant dense<0.000000e+00> : vector<256x128xf32>
    %3 = tpu.matmul %1, %2, %cst {dimension_numbers = #tpu.dot_dimension_numbers<[1], [0], [0], [1], [0, 0, 1, 1], [], []>} : vector<256x8xf32>, vector<8x128xf32>, vector<256x128xf32> -> vector<256x128xf32>
    %cst_5 = arith.constant dense<0.000000e+00> : vector<256x128xf32>
    %4 = tpu.matmul %0, %3, %cst_5 {dimension_numbers = #tpu.dot_dimension_numbers<[1], [0], [0], [1], [0, 0, 1, 1], [], []>} : vector<256x256xf32>, vector<256x128xf32>, vector<256x128xf32> -> vector<256x128xf32>
    %c0_6 = arith.constant 0 : index
    %c0_7 = arith.constant 0 : index
    %5 = vector.load %arg4[%c0_6, %c0_7] : memref<1x128xf32, #tpu.memory_space<vmem>>, vector<1x128xf32>
    %6 = vector.broadcast %5 : vector<1x128xf32> to vector<256x128xf32>
    %7 = arith.addf %4, %6 : vector<256x128xf32>
    %cst_8 = arith.constant 0.000000e+00 : f32
    %8 = vector.broadcast %cst_8 : f32 to vector<256x128xf32>
    %9 = arith.maximumf %7, %8 : vector<256x128xf32>
    %c0_9 = arith.constant 0 : index
    %c0_10 = arith.constant 0 : index
    %10 = vector.load %arg5[%c0_9, %c0_10] : memref<128x128xf32, #tpu.memory_space<vmem>>, vector<128x128xf32>
    %cst_11 = arith.constant dense<0.000000e+00> : vector<256x128xf32>
    %11 = tpu.matmul %9, %10, %cst_11 {dimension_numbers = #tpu.dot_dimension_numbers<[1], [0], [0], [1], [0, 0, 1, 1], [], []>} : vector<256x128xf32>, vector<128x128xf32>, vector<256x128xf32> -> vector<256x128xf32>
    %cst_12 = arith.constant dense<0.000000e+00> : vector<256x128xf32>
    %12 = tpu.matmul %0, %11, %cst_12 {dimension_numbers = #tpu.dot_dimension_numbers<[1], [0], [0], [1], [0, 0, 1, 1], [], []>} : vector<256x256xf32>, vector<256x128xf32>, vector<256x128xf32> -> vector<256x128xf32>
    %c0_13 = arith.constant 0 : index
    %c0_14 = arith.constant 0 : index
    %13 = vector.load %arg6[%c0_13, %c0_14] : memref<1x128xf32, #tpu.memory_space<vmem>>, vector<1x128xf32>
    %14 = vector.broadcast %13 : vector<1x128xf32> to vector<256x128xf32>
    %15 = arith.addf %12, %14 : vector<256x128xf32>
    %c0_15 = arith.constant 0 : index
    %c0_16 = arith.constant 0 : index
    %16 = vector.load %arg7[%c0_15, %c0_16] : memref<1x128xf32, #tpu.memory_space<vmem>>, vector<1x128xf32>
    %c0_17 = arith.constant 0 : index
    %c0_18 = arith.constant 0 : index
    %17 = vector.load %arg8[%c0_17, %c0_18] : memref<1x128xf32, #tpu.memory_space<vmem>>, vector<1x128xf32>
    %18 = tpu.iota {dimensions = array<i32: 1>} : vector<256x128xi32>
    %c32_i32 = arith.constant 32 : i32
    %19 = vector.broadcast %c32_i32 : i32 to vector<256x128xi32>
    %20 = arith.cmpi slt, %18, %19 : vector<256x128xi32>
    %cst_19 = arith.constant 0.000000e+00 : f32
    %21 = vector.broadcast %cst_19 : f32 to vector<256x128xf32>
    %22 = arith.select %20, %15, %21 : vector<256x128xi1>, vector<256x128xf32>
    %cst_20 = arith.constant dense<0.000000e+00> : vector<256xf32>
    %23 = vector.multi_reduction <add>, %22, %cst_20 [1] : vector<256x128xf32> to vector<256xf32>
    %24 = vector.shape_cast %23 : vector<256xf32> to vector<256x1xf32>
    %cst_21 = arith.constant 3.125000e-02 : f32
    %25 = vector.broadcast %cst_21 : f32 to vector<256x1xf32>
    %26 = arith.mulf %24, %25 : vector<256x1xf32>
    %27 = vector.broadcast %26 : vector<256x1xf32> to vector<256x128xf32>
    %28 = arith.subf %15, %27 : vector<256x128xf32>
    %cst_22 = arith.constant 0.000000e+00 : f32
    %29 = vector.broadcast %cst_22 : f32 to vector<256x128xf32>
    %30 = arith.select %20, %28, %29 : vector<256x128xi1>, vector<256x128xf32>
    %31 = arith.mulf %30, %30 : vector<256x128xf32>
    %cst_23 = arith.constant dense<0.000000e+00> : vector<256xf32>
    %32 = vector.multi_reduction <add>, %31, %cst_23 [1] : vector<256x128xf32> to vector<256xf32>
    %33 = vector.shape_cast %32 : vector<256xf32> to vector<256x1xf32>
    %cst_24 = arith.constant 3.125000e-02 : f32
    %34 = vector.broadcast %cst_24 : f32 to vector<256x1xf32>
    %35 = arith.mulf %33, %34 : vector<256x1xf32>
    %cst_25 = arith.constant 9.99999974E-6 : f32
    %36 = vector.broadcast %cst_25 : f32 to vector<256x1xf32>
    %37 = arith.addf %35, %36 : vector<256x1xf32>
    %38 = math.rsqrt %37 : vector<256x1xf32>
    %39 = vector.broadcast %38 : vector<256x1xf32> to vector<256x128xf32>
    %40 = arith.mulf %30, %39 : vector<256x128xf32>
    %41 = vector.broadcast %16 : vector<1x128xf32> to vector<256x128xf32>
    %42 = arith.mulf %40, %41 : vector<256x128xf32>
    %43 = vector.broadcast %17 : vector<1x128xf32> to vector<256x128xf32>
    %44 = arith.addf %42, %43 : vector<256x128xf32>
    %c0_26 = arith.constant 0 : index
    %c0_27 = arith.constant 0 : index
    %45 = vector.load %arg9[%c0_26, %c0_27] : memref<256x128xf32, #tpu.memory_space<vmem>>, vector<256x128xf32>
    tpu.vector_store %arg9[%c0_26, %c0_27], %44 {strides = array<i32>} : memref<256x128xf32, #tpu.memory_space<vmem>>, vector<256x128xf32>,
    return
  }
  func.func @transform_0(%arg0: i32) -> (i32, i32) {
    %c0_i32 = arith.constant 0 : i32
    %c0_i32_0 = arith.constant 0 : i32
    %c0_i32_1 = arith.constant 0 : i32
    return %c0_i32, %c0_i32_0 : i32, i32
  }
  func.func @transform_1(%arg0: i32) -> (i32, i32) {
    %c0_i32 = arith.constant 0 : i32
    %c0_i32_0 = arith.constant 0 : i32
    %c0_i32_1 = arith.constant 0 : i32
    return %c0_i32, %c0_i32_0 : i32, i32
  }
  func.func @transform_2(%arg0: i32) -> (i32, i32) {
    %c0_i32 = arith.constant 0 : i32
    %c0_i32_0 = arith.constant 0 : i32
    %c0_i32_1 = arith.constant 0 : i32
    return %c0_i32, %c0_i32_0 : i32, i32
  }
  func.func @transform_3(%arg0: i32) -> (i32, i32) {
    %c0_i32 = arith.constant 0 : i32
    %c0_i32_0 = arith.constant 0 : i32
    %c0_i32_1 = arith.constant 0 : i32
    return %c0_i32, %c0_i32_0 : i32, i32
  }
  func.func @transform_4(%arg0: i32) -> (i32, i32) {
    %c0_i32 = arith.constant 0 : i32
    %c0_i32_0 = arith.constant 0 : i32
    %c0_i32_1 = arith.constant 0 : i32
    return %c0_i32, %c0_i32_0 : i32, i32
  }
  func.func @transform_5(%arg0: i32) -> (i32, i32) {
    %c0_i32 = arith.constant 0 : i32
    %c0_i32_0 = arith.constant 0 : i32
    %c0_i32_1 = arith.constant 0 : i32
    return %c0_i32, %c0_i32_0 : i32, i32
  }
  func.func @transform_6(%arg0: i32) -> (i32, i32) {
    %c0_i32 = arith.constant 0 : i32
    %c0_i32_0 = arith.constant 0 : i32
    %c0_i32_1 = arith.constant 0 : i32
    return %c0_i32, %c0_i32_0 : i32, i32
  }
  func.func @transform_7(%arg0: i32) -> (i32, i32) {
    %c0_i32 = arith.constant 0 : i32
    %c0_i32_0 = arith.constant 0 : i32
    %c0_i32_1 = arith.constant 0 : i32
    return %c0_i32, %c0_i32_0 : i32, i32
  }
  func.func @transform_8(%arg0: i32) -> (i32, i32) {
    %c0_i32 = arith.constant 0 : i32
    %c0_i32_0 = arith.constant 0 : i32
    %c0_i32_1 = arith.constant 0 : i32
    return %c0_i32, %c0_i32_0 : i32, i32
  }
}

</mosaic_0001>

<bundles_post_ra>
// kernel: tpu_custom_call.1
= control target key start
LH: loop header
LB: loop body
LE: loop exit
PB: predicated region body
PF: predicated region fallthrough
CT: control target
= control target key end

     0   :  { %13 = vsyncpa [#allocation3], 0  ;;  %s3368_s0 = inlined_call_operand.hbm [shape: f32[256,256], index: 0, kind: input, shape index: {}]   ;;  %s3369_s1 = inlined_call_operand.vmem [shape: f32[256,8], index: 1, kind: input, shape index: {}]   ;;  %s3370_s2 = inlined_call_operand.vmem [shape: f32[8,128], index: 2, kind: input, shape index: {}]   ;;  %s3371_s3 = inlined_call_operand.vmem [shape: f32[1,128], index: 3, kind: input, shape index: {}]   ;;  %s3372_s4 = inlined_call_operand.vmem [shape: f32[128,128], index: 4, kind: input, shape index: {}]   ;;  %s3373_s5 = inlined_call_operand.vmem [shape: f32[1,128], index: 5, kind: input, shape index: {}]   ;;  %s3374_s6 = inlined_call_operand.vmem [shape: f32[1,128], index: 6, kind: input, shape index: {}]   ;;  %s3375_s7 = inlined_call_operand.vmem [shape: f32[1,128], index: 7, kind: input, shape index: {}]   ;;  %s3376_s8 = inlined_call_operand.hbm [shape: f32[256,128], index: 8, kind: output, shape index: {}]  }
   0x1   :  { %14 = vsyncpa [#allocation4], 0  ;;  %s2172_s27 = smov [#allocation2]  }
   0x2   :  { %s20_s28 = sshll.u32 %s2172_s27, 4  ;;  %s21_s28 = int_to_ptr.vmem [resolvable:$true] %s20_s28 }
   0x3   :  { %s2136_s29 = scalar_lea.vmem %s21_s28, 8192  ;;  %p2141_p1 = scmp.lt.s32.totalorder %s21_s28, %s21_s28 }
   0x4   :  { %p2137_p0 = scmp.ne.s32.totalorder %s21_s28, %s2136_s29  ;;  %p2142_p2 = scmp.lt.s32.totalorder %s2136_s29, %s2136_s29 }
   0x6   :  { %p2143_p3 = por %p2142_p2, %p2141_p1 }
   0x8   :  { %p2144_p4 = pnand %p2143_p3, %p2137_p0 }
   0xa   :  { %2147 = shalt.err (!%p2144_p4)
}
   0xb   :  { %s2173_s30 = smov 256   ;;  %s2174_s9 = smov 16  }
   0xc   :  { %26 = dma.hbm_to_vmem [thread:$0]  %s3368_s0, 8192, %s21_s28, [#allocation3], %s2173_s30, %s2173_s30, %s2174_s9  }
   0xd   :  { %2168 = dma.done.wait [#allocation3], 8192  }
   0xe   :  { %2169 = vsyncadd [#allocation3], 4294959104  ;;  %vm141_vm0 = vcmask 64512   ;;  %v140_v0 = vld [vmem:[%s3370_s2] sm:$0xff]  ;;  %v109_v2 = vld [vmem:[%s3369_s1 + $0x8] sm:$0xff]  ;;  %v3377_v33 = vmov 0.0  }
   0xf   :  { %v108_v1 = vld [vmem:[%s3369_s1] sm:$0xff]  ;;  %1863 = vmatprep.subr.mxu1 %v140_v0  ;;  %v110_v3 = vld [vmem:[%s3369_s1 + $0x10] sm:$0xff]  ;;  %v111_v4 = vld [vmem:[%s3369_s1 + $0x18] sm:$0xff] }
  0x10   :  { %1865 = vmatprep.mubr.msk.f32.mxu1 %vm141_vm0, %v108_v1  ;;  %1864 = vmatpush3.msra.mxu1 %v140_v0  ;;  %v112_v5 = vld [vmem:[%s3369_s1 + $0x20] sm:$0xff]  ;;  %v113_v6 = vld [vmem:[%s3369_s1 + $0x28] sm:$0xff]  ;;  %v114_v7 = vld [vmem:[%s3369_s1 + $0x30] sm:$0xff] }
  0x11   :  { %1866 = vmatmul.mubr.msk.f32.vlgmr.msra.gmra.mxu1 %vm141_vm0, %v109_v2  ;;  %v115_v8 = vld [vmem:[%s3369_s1 + $0x38] sm:$0xff]  ;;  %v116_v9 = vld [vmem:[%s3369_s1 + $0x40] sm:$0xff]  ;;  %v117_v10 = vld [vmem:[%s3369_s1 + $0x48] sm:$0xff]  ;;  %470 = vmatprep.subr.mxu1 %v3377_v33 }
  0x12   :  { %1868 = vmatprep.mubr.msk.f32.mxu1 %vm141_vm0, %v110_v3  ;;  %v118_v11 = vld [vmem:[%s3369_s1 + $0x50] sm:$0xff]  ;;  %v119_v12 = vld [vmem:[%s3369_s1 + $0x58] sm:$0xff]  ;;  %v120_v13 = vld [vmem:[%s3369_s1 + $0x60] sm:$0xff] }
  0x13   :  { %v121_v14 = vld [vmem:[%s3369_s1 + $0x68] sm:$0xff]  ;;  %v122_v15 = vld [vmem:[%s3369_s1 + $0x70] sm:$0xff]  ;;  %v123_v16 = vld [vmem:[%s3369_s1 + $0x78] sm:$0xff] }
  0x14   :  { %v124_v17 = vld [vmem:[%s3369_s1 + $0x80] sm:$0xff]  ;;  %v125_v18 = vld [vmem:[%s3369_s1 + $0x88] sm:$0xff]  ;;  %v126_v19 = vld [vmem:[%s3369_s1 + $0x90] sm:$0xff] }
  0x15   :  { %1869 = vmatmul.mubr.msk.f32.gmra.mxu1 %vm141_vm0, %v111_v4  ;;  %v127_v20 = vld [vmem:[%s3369_s1 + $0x98] sm:$0xff]  ;;  %v128_v21 = vld [vmem:[%s3369_s1 + $0xa0] sm:$0xff]  ;;  %v129_v22 = vld [vmem:[%s3369_s1 + $0xa8] sm:$0xff] }
  0x16   :  { %1871 = vmatprep.mubr.msk.f32.mxu1 %vm141_vm0, %v112_v5  ;;  %v130_v23 = vld [vmem:[%s3369_s1 + $0xb0] sm:$0xff]  ;;  %v131_v24 = vld [vmem:[%s3369_s1 + $0xb8] sm:$0xff]  ;;  %v132_v25 = vld [vmem:[%s3369_s1 + $0xc0] sm:$0xff] }
  0x17   :  { %v133_v26 = vld [vmem:[%s3369_s1 + $0xc8] sm:$0xff]  ;;  %v134_v27 = vld [vmem:[%s3369_s1 + $0xd0] sm:$0xff]  ;;  %v135_v28 = vld [vmem:[%s3369_s1 + $0xd8] sm:$0xff] }
  0x18   :  { %v136_v29 = vld [vmem:[%s3369_s1 + $0xe0] sm:$0xff]  ;;  %v137_v30 = vld [vmem:[%s3369_s1 + $0xe8] sm:$0xff]  ;;  %v138_v31 = vld [vmem:[%s3369_s1 + $0xf0] sm:$0xff] }
  0x19   :  { %1872 = vmatmul.mubr.msk.f32.gmra.mxu1 %vm141_vm0, %v113_v6  ;;  %v139_v32 = vld [vmem:[%s3369_s1 + $0xf8] sm:$0xff]  ;;  %v2359_v34 = vld [vmem:[#allocation2 + $0x8] sm:$0xff]  ;;  %v741_v4 = vld [vmem:[%s3372_s4 + $0x70] sm:$0xff] }
  0x1a   :  { %1874 = vmatprep.mubr.msk.f32.mxu1 %vm141_vm0, %v114_v7  ;;  %v742_v3 = vld [vmem:[%s3372_s4 + $0x78] sm:$0xff]  ;;  %v2403_v5 = vld [vmem:[#allocation2] sm:$0xff]  ;;  %v740_v7 = vld [vmem:[%s3372_s4 + $0x68] sm:$0xff] }
  0x1b   :  { %1913 = vmatprep.subr.mxu0 %v742_v3  ;;  %v2406_v6 = vld [vmem:[#allocation2 + $0x18] sm:$0xff] }
  0x1c   :  { %1914 = vmatpush3.msra.mxu0 %v742_v3  ;;  %v2587_v3 = vld [vmem:[#allocation2 + $0x170] sm:$0xff] }
  0x1d   :  { %1875 = vmatmul.mubr.msk.f32.gmra.mxu1 %vm141_vm0, %v115_v8  ;;  %1915 = vmatprep.subr.mxu0 %v741_v4  ;;  %v739_v8 = vld [vmem:[%s3372_s4 + $0x60] sm:$0xff]  ;;  %3398 = vst [vmem:[#allocation12_spill] sm:$0xff] %v2587_v3 }
  0x1e   :  { %1877 = vmatprep.mubr.msk.f32.mxu1 %vm141_vm0, %v116_v9  ;;  %1916 = vmatpush3.msra.mxu0 %v741_v4  ;;  %v2417_v9 = vld [vmem:[#allocation2 + $0x10] sm:$0xff]  ;;  %v2589_v4 = vld [vmem:[#allocation2 + $0x188] sm:$0xff] }
  0x1f   :  { %1917 = vmatprep.subr.mxu0 %v740_v7  ;;  %3399 = vst [vmem:[#allocation13_spill] sm:$0xff] %v2589_v4 }
  0x20   :  { %1918 = vmatpush3.msra.mxu0 %v740_v7  ;;  %v2593_v7 = vld [vmem:[#allocation2 + $0x180] sm:$0xff] }
  0x21   :  { %1878 = vmatmul.mubr.msk.f32.gmra.mxu1 %vm141_vm0, %v117_v10  ;;  %v2419_v10 = vld [vmem:[#allocation2 + $0x28] sm:$0xff]  ;;  %1919 = vmatprep.subr.mxu0 %v739_v8  ;;  %3400 = vst [vmem:[#allocation14_spill] sm:$0xff] %v2593_v7 }
  0x22   :  { %1880 = vmatprep.mubr.msk.f32.mxu1 %vm141_vm0, %v118_v11  ;;  %v738_v11 = vld [vmem:[%s3372_s4 + $0x58] sm:$0xff]  ;;  %1920 = vmatpush3.msra.mxu0 %v739_v8 }
  0x23   :  { %1921 = vmatprep.subr.mxu0 %v738_v11  ;;  %v2595_v8 = vld [vmem:[#allocation2 + $0x198] sm:$0xff] }
  0x24   :  { %1922 = vmatpush3.msra.mxu0 %v738_v11  ;;  %3401 = vst [vmem:[#allocation15_spill] sm:$0xff] %v2595_v8  ;;  %v2599_v11 = vld [vmem:[#allocation2 + $0x190] sm:$0xff] }
  0x25   :  { %1881 = vmatmul.mubr.msk.f32.gmra.mxu1 %vm141_vm0, %v119_v12  ;;  %v737_v12 = vld [vmem:[%s3372_s4 + $0x50] sm:$0xff]  ;;  %3402 = vst [vmem:[#allocation16_spill] sm:$0xff] %v2599_v11 }
  0x26   :  { %1883 = vmatprep.mubr.msk.f32.mxu1 %vm141_vm0, %v120_v13  ;;  %v2430_v13 = vld [vmem:[#allocation2 + $0x20] sm:$0xff]  ;;  %1923 = vmatprep.subr.mxu0 %v737_v12 }
  0x27   :  { %1924 = vmatpush3.msra.mxu0 %v737_v12  ;;  %v2601_v12 = vld [vmem:[#allocation2 + $0x1a8] sm:$0xff] }
  0x28   :  { %3403 = vst [vmem:[#allocation17_spill] sm:$0xff] %v2601_v12 }
  0x29   :  { %1884 = vmatmul.mubr.msk.f32.gmra.mxu1 %vm141_vm0, %v121_v14  ;;  %v2432_v14 = vld [vmem:[#allocation2 + $0x38] sm:$0xff] }
  0x2a   :  { %1886 = vmatprep.mubr.msk.f32.mxu1 %vm141_vm0, %v122_v15  ;;  %v736_v15 = vld [vmem:[%s3372_s4 + $0x48] sm:$0xff] }
  0x2b   :  { %1925 = vmatprep.subr.mxu0 %v736_v15 }
  0x2c   :  { %1926 = vmatpush3.msra.mxu0 %v736_v15  ;;  %v2605_v15 = vld [vmem:[#allocation2 + $0x1a0] sm:$0xff] }
  0x2d   :  { %1887 = vmatmul.mubr.msk.f32.gmra.mxu1 %vm141_vm0, %v123_v16  ;;  %v735_v16 = vld [vmem:[%s3372_s4 + $0x40] sm:$0xff]  ;;  %3404 = vst [vmem:[#allocation18_spill] sm:$0xff] %v2605_v15 }
  0x2e   :  { %1889 = vmatprep.mubr.msk.f32.mxu1 %vm141_vm0, %v124_v17  ;;  %v2442_v17 = vld [vmem:[#allocation2 + $0x30] sm:$0xff]  ;;  %1927 = vmatprep.subr.mxu0 %v735_v16 }
  0x2f   :  { %1928 = vmatpush3.msra.mxu0 %v735_v16  ;;  %v2607_v16 = vld [vmem:[#allocation2 + $0x1b8] sm:$0xff] }
  0x30   :  { %3405 = vst [vmem:[#allocation19_spill] sm:$0xff] %v2607_v16 }
  0x31   :  { %1890 = vmatmul.mubr.msk.f32.gmra.mxu1 %vm141_vm0, %v125_v18  ;;  %v2444_v18 = vld [vmem:[#allocation2 + $0x48] sm:$0xff] }
  0x32   :  { %1892 = vmatprep.mubr.msk.f32.mxu1 %vm141_vm0, %v126_v19  ;;  %v734_v19 = vld [vmem:[%s3372_s4 + $0x38] sm:$0xff] }
  0x33   :  { %1929 = vmatprep.subr.mxu0 %v734_v19 }
  0x34   :  { %1930 = vmatpush3.msra.mxu0 %v734_v19  ;;  %v2611_v19 = vld [vmem:[#allocation2 + $0x1b0] sm:$0xff] }
  0x35   :  { %1893 = vmatmul.mubr.msk.f32.gmra.mxu1 %vm141_vm0, %v127_v20  ;;  %v733_v20 = vld [vmem:[%s3372_s4 + $0x30] sm:$0xff]  ;;  %3406 = vst [vmem:[#allocation20_spill] sm:$0xff] %v2611_v19 }
  0x36   :  { %1895 = vmatprep.mubr.msk.f32.mxu1 %vm141_vm0, %v128_v21  ;;  %v2454_v21 = vld [vmem:[#allocation2 + $0x40] sm:$0xff]  ;;  %1931 = vmatprep.subr.mxu0 %v733_v20 }
  0x37   :  { %1932 = vmatpush3.msra.mxu0 %v733_v20  ;;  %v2613_v20 = vld [vmem:[#allocation2 + $0x1c8] sm:$0xff] }
  0x38   :  { %3407 = vst [vmem:[#allocation21_spill] sm:$0xff] %v2613_v20 }
  0x39   :  { %1896 = vmatmul.mubr.msk.f32.gmra.mxu1 %vm141_vm0, %v129_v22  ;;  %v2456_v22 = vld [vmem:[#allocation2 + $0x58] sm:$0xff] }
  0x3a   :  { %1898 = vmatprep.mubr.msk.f32.mxu1 %vm141_vm0, %v130_v23  ;;  %v732_v23 = vld [vmem:[%s3372_s4 + $0x28] sm:$0xff] }
  0x3b   :  { %1933 = vmatprep.subr.mxu0 %v732_v23 }
  0x3c   :  { %1934 = vmatpush3.msra.mxu0 %v732_v23  ;;  %v2617_v23 = vld [vmem:[#allocation2 + $0x1c0] sm:$0xff] }
  0x3d   :  { %1899 = vmatmul.mubr.msk.f32.gmra.mxu1 %vm141_vm0, %v131_v24  ;;  %v731_v24 = vld [vmem:[%s3372_s4 + $0x20] sm:$0xff]  ;;  %3408 = vst [vmem:[#allocation22_spill] sm:$0xff] %v2617_v23 }
  0x3e   :  { %1901 = vmatprep.mubr.msk.f32.mxu1 %vm141_vm0, %v132_v25  ;;  %v2466_v25 = vld [vmem:[#allocation2 + $0x50] sm:$0xff]  ;;  %1935 = vmatprep.subr.mxu0 %v731_v24 }
  0x3f   :  { %1936 = vmatpush3.msra.mxu0 %v731_v24  ;;  %v103_v24 = vld [vmem:[#allocation2 + $0x1d8] sm:$0xff] }
  0x41   :  { %1902 = vmatmul.mubr.msk.f32.gmra.mxu1 %vm141_vm0, %v133_v26  ;;  %v2468_v26 = vld [vmem:[#allocation2 + $0x68] sm:$0xff] }
  0x42   :  { %1904 = vmatprep.mubr.msk.f32.mxu1 %vm141_vm0, %v134_v27  ;;  %v2472_v27 = vld [vmem:[#allocation2 + $0x60] sm:$0xff] }
  0x45   :  { %1905 = vmatmul.mubr.msk.f32.gmra.mxu1 %vm141_vm0, %v135_v28  ;;  %v2474_v28 = vld [vmem:[#allocation2 + $0x78] sm:$0xff] }
  0x46   :  { %1907 = vmatprep.mubr.msk.f32.mxu1 %vm141_vm0, %v136_v29  ;;  %v2478_v29 = vld [vmem:[#allocation2 + $0x70] sm:$0xff] }
  0x49   :  { %1908 = vmatmul.mubr.msk.f32.gmra.mxu1 %vm141_vm0, %v137_v30  ;;  %v2480_v30 = vld [vmem:[#allocation2 + $0x88] sm:$0xff] }
  0x4a   :  { %1910 = vmatprep.mubr.msk.f32.mxu1 %vm141_vm0, %v138_v31  ;;  %v2484_v31 = vld [vmem:[#allocation2 + $0x80] sm:$0xff] }
  0x4d   :  { %1911 = vmatmul.mubr.msk.f32.gmra.mxu1 %vm141_vm0, %v139_v32  ;;  %v2486_v32 = vld [vmem:[#allocation2 + $0x98] sm:$0xff] }
  0x4e   :  { %534 = vmatprep.mubr.f32.mxu1 %v2359_v34 }
  0xd1   :  { %v1867_v35 = vpop.f32.mrf.mxu1 }
  0xd3   :  { %v304_v36 = vpop.f32.mrf.mxu1 }
  0xd5   :  { %v1870_v37 = vpop.f32.mrf.mxu1 }
  0xd7   :  { %v314_v38 = vpop.f32.mrf.mxu1 }
  0xd9   :  { %v1873_v39 = vpop.f32.mrf.mxu1 }
  0xdb   :  { %v324_v40 = vpop.f32.mrf.mxu1 }
  0xdd   :  { %v1876_v41 = vpop.f32.mrf.mxu1 }
  0xdf   :  { %v334_v42 = vpop.f32.mrf.mxu1 }
  0xe1   :  { %v1879_v43 = vpop.f32.mrf.mxu1 }
  0xe3   :  { %v344_v44 = vpop.f32.mrf.mxu1 }
  0xe5   :  { %v1882_v45 = vpop.f32.mrf.mxu1 }
  0xe7   :  { %v354_v46 = vpop.f32.mrf.mxu1 }
  0xe9   :  { %v1885_v47 = vpop.f32.mrf.mxu1 }
  0xeb   :  { %v364_v48 = vpop.f32.mrf.mxu1 }
  0xed   :  { %v1888_v49 = vpop.f32.mrf.mxu1 }
  0xee   :  { %471 = vmatpush1.msra.mxu1 %v1888_v49  ;;  %v2532_v49 = vld [vmem:[#allocation2 + $0x100] sm:$0xff] }
  0xef   :  { %v374_v50 = vpop.f32.mrf.mxu1  ;;  %472 = vmatprep.subr.mxu1 %v3377_v33 }
  0xf0   :  { %473 = vmatpush1.msra.mxu1 %v374_v50  ;;  %v2534_v50 = vld [vmem:[#allocation2 + $0x118] sm:$0xff] }
  0xf1   :  { %v2363_v51 = vpop.f32.mrf.mxu1  ;;  %474 = vmatprep.subr.mxu1 %v3377_v33 }
  0xf2   :  { %475 = vmatpush1.msra.mxu1 %v1885_v47  ;;  %v2526_v47 = vld [vmem:[#allocation2 + $0xf0] sm:$0xff] }
  0xf3   :  { %v2366_v52 = vpop.f32.mrf.mxu1  ;;  %476 = vmatprep.subr.mxu1 %v3377_v33 }
  0xf4   :  { %477 = vmatpush1.msra.mxu1 %v364_v48  ;;  %v2528_v48 = vld [vmem:[#allocation2 + $0x108] sm:$0xff] }
  0xf5   :  { %v1894_v53 = vpop.f32.mrf.mxu1  ;;  %478 = vmatprep.subr.mxu1 %v3377_v33 }
  0xf6   :  { %479 = vmatpush1.msra.mxu1 %v1882_v45  ;;  %v2520_v45 = vld [vmem:[#allocation2 + $0xe0] sm:$0xff] }
  0xf7   :  { %v394_v54 = vpop.f32.mrf.mxu1  ;;  %480 = vmatprep.subr.mxu1 %v3377_v33 }
  0xf8   :  { %481 = vmatpush1.msra.mxu1 %v354_v46  ;;  %v2522_v46 = vld [vmem:[#allocation2 + $0xf8] sm:$0xff] }
  0xf9   :  { %v1897_v55 = vpop.f32.mrf.mxu1  ;;  %482 = vmatprep.subr.mxu1 %v3377_v33 }
  0xfa   :  { %483 = vmatpush1.msra.mxu1 %v1879_v43  ;;  %v2514_v43 = vld [vmem:[#allocation2 + $0xd0] sm:$0xff] }
  0xfb   :  { %v404_v56 = vpop.f32.mrf.mxu1  ;;  %484 = vmatprep.subr.mxu1 %v3377_v33 }
  0xfc   :  { %485 = vmatpush1.msra.mxu1 %v344_v44  ;;  %v2516_v44 = vld [vmem:[#allocation2 + $0xe8] sm:$0xff] }
  0xfd   :  { %v1900_v57 = vpop.f32.mrf.mxu1  ;;  %486 = vmatprep.subr.mxu1 %v3377_v33 }
  0xfe   :  { %487 = vmatpush1.msra.mxu1 %v1876_v41  ;;  %v2508_v41 = vld [vmem:[#allocation2 + $0xc0] sm:$0xff] }
  0xff   :  { %v414_v58 = vpop.f32.mrf.mxu1  ;;  %488 = vmatprep.subr.mxu1 %v3377_v33 }
 0x100   :  { %489 = vmatpush1.msra.mxu1 %v334_v42  ;;  %v2510_v42 = vld [vmem:[#allocation2 + $0xd8] sm:$0xff] }
 0x101   :  { %v1903_v59 = vpop.f32.mrf.mxu1  ;;  %490 = vmatprep.subr.mxu1 %v3377_v33 }
 0x102   :  { %491 = vmatpush1.msra.mxu1 %v1873_v39  ;;  %v2502_v39 = vld [vmem:[#allocation2 + $0xb0] sm:$0xff] }
 0x103   :  { %v424_v60 = vpop.f32.mrf.mxu1  ;;  %492 = vmatprep.subr.mxu1 %v3377_v33 }
 0x104   :  { %493 = vmatpush1.msra.mxu1 %v324_v40  ;;  %v2504_v40 = vld [vmem:[#allocation2 + $0xc8] sm:$0xff] }
 0x105   :  { %v1906_v61 = vpop.f32.mrf.mxu1  ;;  %494 = vmatprep.subr.mxu1 %v3377_v33 }
 0x106   :  { %495 = vmatpush1.msra.mxu1 %v1870_v37  ;;  %v2496_v37 = vld [vmem:[#allocation2 + $0xa0] sm:$0xff] }
 0x107   :  { %v434_v62 = vpop.f32.mrf.mxu1  ;;  %496 = vmatprep.subr.mxu1 %v3377_v33 }
 0x108   :  { %497 = vmatpush1.msra.mxu1 %v314_v38  ;;  %v2498_v38 = vld [vmem:[#allocation2 + $0xb8] sm:$0xff] }
 0x109   :  { %v1909_v63 = vpop.f32.mrf.mxu1  ;;  %498 = vmatprep.subr.mxu1 %v3377_v33 }
 0x10a   :  { %499 = vmatpush1.msra.mxu1 %v1867_v35  ;;  %v2490_v35 = vld [vmem:[#allocation2 + $0x90] sm:$0xff] }
 0x10b   :  { %v444_v0 = vpop.f32.mrf.mxu1  ;;  %500 = vmatprep.subr.mxu1 %v3377_v33 }
 0x10c   :  { %501 = vmatpush1.msra.mxu1 %v304_v36  ;;  %v2492_v36 = vld [vmem:[#allocation2 + $0xa8] sm:$0xff] }
 0x10d   :  { %v1912_v1 = vpop.f32.mrf.mxu1  ;;  %502 = vmatprep.subr.mxu1 %v3377_v33 }
 0x10e   :  { %503 = vmatpush2.msra.mxu1 %v1912_v1  ;;  %v2581_v1 = vld [vmem:[#allocation2 + $0x160] sm:$0xff] }
 0x10f   :  { %v454_v2 = vpop.f32.mrf.mxu1  ;;  %504 = vmatprep.subr.mxu1 %v3377_v33  ;;  %3396 = vst [vmem:[#allocation10_spill] sm:$0xff] %v2581_v1 }
 0x110   :  { %505 = vmatpush2.msra.mxu1 %v454_v2  ;;  %v2583_v2 = vld [vmem:[#allocation2 + $0x178] sm:$0xff] }
 0x111   :  { %506 = vmatprep.subr.mxu1 %v3377_v33  ;;  %3397 = vst [vmem:[#allocation11_spill] sm:$0xff] %v2583_v2 }
 0x112   :  { %507 = vmatpush2.msra.mxu1 %v1909_v63  ;;  %v2575_v63 = vld [vmem:[#allocation2 + $0x150] sm:$0xff] }
 0x113   :  { %508 = vmatprep.subr.mxu1 %v3377_v33  ;;  %3394 = vst [vmem:[#allocation8_spill] sm:$0xff] %v2575_v63 }
 0x114   :  { %509 = vmatpush2.msra.mxu1 %v444_v0  ;;  %v2577_v0 = vld [vmem:[#allocation2 + $0x168] sm:$0xff] }
 0x115   :  { %510 = vmatprep.subr.mxu1 %v3377_v33  ;;  %3395 = vst [vmem:[#allocation9_spill] sm:$0xff] %v2577_v0 }
 0x116   :  { %511 = vmatpush2.msra.mxu1 %v1906_v61  ;;  %v2569_v61 = vld [vmem:[#allocation2 + $0x140] sm:$0xff] }
 0x117   :  { %512 = vmatprep.subr.mxu1 %v3377_v33 }
 0x118   :  { %513 = vmatpush2.msra.mxu1 %v434_v62  ;;  %v2571_v62 = vld [vmem:[#allocation2 + $0x158] sm:$0xff] }
 0x119   :  { %514 = vmatprep.subr.mxu1 %v3377_v33 }
 0x11a   :  { %515 = vmatpush2.msra.mxu1 %v1903_v59  ;;  %v2562_v59 = vld [vmem:[#allocation2 + $0x130] sm:$0xff] }
 0x11b   :  { %516 = vmatprep.subr.mxu1 %v3377_v33 }
 0x11c   :  { %517 = vmatpush2.msra.mxu1 %v424_v60  ;;  %v2565_v60 = vld [vmem:[#allocation2 + $0x148] sm:$0xff] }
 0x11d   :  { %518 = vmatprep.subr.mxu1 %v3377_v33 }
 0x11e   :  { %519 = vmatpush2.msra.mxu1 %v1900_v57  ;;  %v2555_v57 = vld [vmem:[#allocation2 + $0x138] sm:$0xff] }
 0x11f   :  { %520 = vmatprep.subr.mxu1 %v3377_v33 }
 0x120   :  { %521 = vmatpush2.msra.mxu1 %v414_v58  ;;  %v727_v58 = vld [vmem:[%s3372_s4] sm:$0xff] }
 0x121   :  { %522 = vmatprep.subr.mxu1 %v3377_v33 }
 0x122   :  { %523 = vmatpush2.msra.mxu1 %v1897_v55  ;;  %v728_v55 = vld [vmem:[%s3372_s4 + $0x8] sm:$0xff] }
 0x123   :  { %524 = vmatprep.subr.mxu1 %v3377_v33 }
 0x124   :  { %525 = vmatpush2.msra.mxu1 %v404_v56  ;;  %v2553_v56 = vld [vmem:[#allocation2 + $0x120] sm:$0xff] }
 0x125   :  { %526 = vmatprep.subr.mxu1 %v3377_v33 }
 0x126   :  { %527 = vmatpush2.msra.mxu1 %v1894_v53  ;;  %v2543_v53 = vld [vmem:[#allocation2 + $0x128] sm:$0xff] }
 0x127   :  { %528 = vmatprep.subr.mxu1 %v3377_v33 }
 0x128   :  { %529 = vmatpush2.msra.mxu1 %v394_v54  ;;  %v729_v54 = vld [vmem:[%s3372_s4 + $0x10] sm:$0xff] }
 0x129   :  { %530 = vmatprep.subr.mxu1 %v3377_v33 }
 0x12a   :  { %531 = vmatpush2.msra.mxu1 %v2363_v51  ;;  %v730_v51 = vld [vmem:[%s3372_s4 + $0x18] sm:$0xff] }
 0x12b   :  { %532 = vmatprep.subr.mxu1 %v3377_v33  ;;  %1937 = vmatprep.subr.mxu0 %v730_v51 }
 0x12c   :  { %533 = vmatpush2.msra.mxu1 %v2366_v52  ;;  %v2541_v52 = vld [vmem:[#allocation2 + $0x110] sm:$0xff]  ;;  %1938 = vmatpush3.msra.mxu0 %v730_v51 }
 0x12d   :  { %535 = vmatmul.mubr.f32.vlgmr.msra.gmra.mxu1 %v2403_v5  ;;  %1993 = vmatprep.subr.mxu1 %v3377_v33  ;;  %v2620_v51 = vld [vmem:[#allocation2 + $0x1d0] sm:$0xff] }
 0x12e   :  { %539 = vmatprep.mubr.f32.mxu1 %v2406_v6  ;;  %1939 = vmatprep.subr.mxu0 %v729_v54 }
 0x12f   :  { %1940 = vmatpush3.msra.mxu0 %v729_v54  ;;  %v2622_v54 = vld [vmem:[#allocation2 + $0x1e8] sm:$0xff] }
 0x130   :  { %1941 = vmatprep.subr.mxu0 %v728_v55 }
 0x131   :  { %540 = vmatmul.mubr.f32.gmra.mxu1 %v2417_v9  ;;  %1942 = vmatpush3.msra.mxu0 %v728_v55  ;;  %v2626_v55 = vld [vmem:[#allocation2 + $0x1e0] sm:$0xff] }
 0x132   :  { %544 = vmatprep.mubr.f32.mxu1 %v2419_v10  ;;  %1943 = vmatprep.subr.mxu0 %v727_v58 }
 0x133   :  { %1944 = vmatpush3.msra.mxu0 %v727_v58  ;;  %v2628_v58 = vld [vmem:[#allocation2 + $0x1f8] sm:$0xff] }
 0x134   :  { %975 = vmatprep.subr.mxu0 %v3377_v33  ;;  %v2632_v33 = vld [vmem:[#allocation2 + $0x1f0] sm:$0xff] }
 0x135   :  { %545 = vmatmul.mubr.f32.gmra.mxu1 %v2430_v13 }
 0x136   :  { %549 = vmatprep.mubr.f32.mxu1 %v2432_v14 }
 0x139   :  { %550 = vmatmul.mubr.f32.gmra.mxu1 %v2442_v17 }
 0x13a   :  { %554 = vmatprep.mubr.f32.mxu1 %v2444_v18 }
 0x13d   :  { %555 = vmatmul.mubr.f32.gmra.mxu1 %v2454_v21 }
 0x13e   :  { %559 = vmatprep.mubr.f32.mxu1 %v2456_v22 }
 0x141   :  { %560 = vmatmul.mubr.f32.gmra.mxu1 %v2466_v25 }
 0x142   :  { %564 = vmatprep.mubr.f32.mxu1 %v2468_v26 }
 0x145   :  { %565 = vmatmul.mubr.f32.gmra.mxu1 %v2472_v27 }
 0x146   :  { %569 = vmatprep.mubr.f32.mxu1 %v2474_v28 }
 0x149   :  { %570 = vmatmul.mubr.f32.gmra.mxu1 %v2478_v29 }
 0x14a   :  { %574 = vmatprep.mubr.f32.mxu1 %v2480_v30 }
 0x14d   :  { %575 = vmatmul.mubr.f32.gmra.mxu1 %v2484_v31 }
 0x14e   :  { %579 = vmatprep.mubr.f32.mxu1 %v2486_v32 }
 0x151   :  { %580 = vmatmul.mubr.f32.gmra.mxu1 %v2490_v35 }
 0x152   :  { %584 = vmatprep.mubr.f32.mxu1 %v2492_v36 }
 0x155   :  { %585 = vmatmul.mubr.f32.gmra.mxu1 %v2496_v37 }
 0x156   :  { %589 = vmatprep.mubr.f32.mxu1 %v2498_v38 }
 0x159   :  { %590 = vmatmul.mubr.f32.gmra.mxu1 %v2502_v39 }
 0x15a   :  { %594 = vmatprep.mubr.f32.mxu1 %v2504_v40 }
 0x15d   :  { %595 = vmatmul.mubr.f32.gmra.mxu1 %v2508_v41 }
 0x15e   :  { %599 = vmatprep.mubr.f32.mxu1 %v2510_v42 }
 0x161   :  { %600 = vmatmul.mubr.f32.gmra.mxu1 %v2514_v43 }
 0x162   :  { %604 = vmatprep.mubr.f32.mxu1 %v2516_v44 }
 0x165   :  { %605 = vmatmul.mubr.f32.gmra.mxu1 %v2520_v45 }
 0x166   :  { %609 = vmatprep.mubr.f32.mxu1 %v2522_v46 }
 0x169   :  { %610 = vmatmul.mubr.f32.gmra.mxu1 %v2526_v47 }
 0x16a   :  { %614 = vmatprep.mubr.f32.mxu1 %v2528_v48 }
 0x16d   :  { %615 = vmatmul.mubr.f32.gmra.mxu1 %v2532_v49 }
 0x16e   :  { %619 = vmatprep.mubr.f32.mxu1 %v2534_v50 }
 0x171   :  { %620 = vmatmul.mubr.f32.gmra.mxu1 %v2541_v52 }
 0x172   :  { %624 = vmatprep.mubr.f32.mxu1 %v2543_v53 }
 0x175   :  { %625 = vmatmul.mubr.f32.gmra.mxu1 %v2553_v56 }
 0x176   :  { %629 = vmatprep.mubr.f32.mxu1 %v2555_v57 }
 0x179   :  { %630 = vmatmul.mubr.f32.gmra.mxu1 %v2562_v59 }
 0x17a   :  { %634 = vmatprep.mubr.f32.mxu1 %v2565_v60 }
 0x17d   :  { %635 = vmatmul.mubr.f32.gmra.mxu1 %v2569_v61 }
 0x17e   :  { %639 = vmatprep.mubr.f32.mxu1 %v2571_v62 }
 0x181   :  { %640 = vmatmul.mubr.f32.gmra.mxu1 %v2575_v63 }
 0x182   :  { %644 = vmatprep.mubr.f32.mxu1 %v2577_v0 }
 0x185   :  { %645 = vmatmul.mubr.f32.gmra.mxu1 %v2581_v1 }
 0x186   :  { %649 = vmatprep.mubr.f32.mxu1 %v2583_v2 }
 0x189   :  { %650 = vmatmul.mubr.f32.gmra.mxu1 %v2587_v3 }
 0x18a   :  { %654 = vmatprep.mubr.f32.mxu1 %v2589_v4 }
 0x18d   :  { %655 = vmatmul.mubr.f32.gmra.mxu1 %v2593_v7 }
 0x18e   :  { %659 = vmatprep.mubr.f32.mxu1 %v2595_v8 }
 0x191   :  { %660 = vmatmul.mubr.f32.gmra.mxu1 %v2599_v11 }
 0x192   :  { %664 = vmatprep.mubr.f32.mxu1 %v2601_v12 }
 0x195   :  { %665 = vmatmul.mubr.f32.gmra.mxu1 %v2605_v15 }
 0x196   :  { %669 = vmatprep.mubr.f32.mxu1 %v2607_v16 }
 0x199   :  { %670 = vmatmul.mubr.f32.gmra.mxu1 %v2611_v19 }
 0x19a   :  { %674 = vmatprep.mubr.f32.mxu1 %v2613_v20 }
 0x19d   :  { %675 = vmatmul.mubr.f32.gmra.mxu1 %v2617_v23  ;;  %v2638_v23 = vld [vmem:[%s3371_s3] ss:$0 sm:$0xff] }
 0x19e   :  { %679 = vmatprep.mubr.f32.mxu1 %v103_v24 }
 0x1a1   :  { %680 = vmatmul.mubr.f32.gmra.mxu1 %v2620_v51 }
 0x1a2   :  { %684 = vmatprep.mubr.f32.mxu1 %v2622_v54 }
 0x1a5   :  { %685 = vmatmul.mubr.f32.gmra.mxu1 %v2626_v55 }
 0x1a6   :  { %689 = vmatprep.mubr.f32.mxu1 %v2628_v58 }
 0x1a9   :  { %690 = vmatmul.mubr.f32.gmra.mxu1 %v2632_v33 }
 0x1aa   :  { %1184 = vmatprep.mubr.f32.mxu1 %v103_v24 }
 0x1ed   :  { %v536_v20 = vpop.f32.mrf.mxu1 }
 0x1ee   :  { %v537_v19 = vadd.f32 %v2638_v23, %v536_v20 }
 0x1ef   :  { %v538_v16 = vpop.f32.mrf.mxu1 }
 0x1f0   :  { %v695_v15 = vmax.f32 %v537_v19, 0.0 }
 0x1f1   :  { %v541_v12 = vpop.f32.mrf.mxu1 }
 0x1f2   :  { %v542_v11 = vadd.f32 %v2638_v23, %v541_v12  ;;  %1945 = vmatprep.mubr.f32.mxu0 %v695_v15 }
 0x1f3   :  { %v543_v8 = vpop.f32.mrf.mxu1 }
 0x1f4   :  { %v696_v7 = vmax.f32 %v542_v11, 0.0 }
 0x1f5   :  { %v546_v4 = vpop.f32.mrf.mxu1 }
 0x1f6   :  { %v547_v3 = vadd.f32 %v2638_v23, %v546_v4  ;;  %1946 = vmatmul.mubr.f32.vlgmr.msra.gmra.mxu0 %v696_v7 }
 0x1f7   :  { %v548_v24 = vpop.f32.mrf.mxu1 }
 0x1f8   :  { %v697_v2 = vmax.f32 %v547_v3, 0.0 }
 0x1f9   :  { %v551_v1 = vpop.f32.mrf.mxu1 }
 0x1fa   :  { %v552_v0 = vadd.f32 %v2638_v23, %v551_v1  ;;  %1948 = vmatprep.mubr.f32.mxu0 %v697_v2 }
 0x1fb   :  { %v553_v63 = vpop.f32.mrf.mxu1 }
 0x1fc   :  { %v698_v20 = vmax.f32 %v552_v0, 0.0 }
 0x1fd   :  { %v556_v16 = vpop.f32.mrf.mxu1 }
 0x1fe   :  { %v557_v19 = vadd.f32 %v2638_v23, %v556_v16  ;;  %1949 = vmatmul.mubr.f32.gmra.mxu0 %v698_v20 }
 0x1ff   :  { %v558_v12 = vpop.f32.mrf.mxu1 }
 0x200   :  { %v699_v15 = vmax.f32 %v557_v19, 0.0 }
 0x201   :  { %v561_v8 = vpop.f32.mrf.mxu1 }
 0x202   :  { %v562_v11 = vadd.f32 %v2638_v23, %v561_v8  ;;  %1951 = vmatprep.mubr.f32.mxu0 %v699_v15 }
 0x203   :  { %v563_v4 = vpop.f32.mrf.mxu1 }
 0x204   :  { %v700_v7 = vmax.f32 %v562_v11, 0.0 }
 0x205   :  { %v566_v24 = vpop.f32.mrf.mxu1 }
 0x206   :  { %v567_v3 = vadd.f32 %v2638_v23, %v566_v24  ;;  %1952 = vmatmul.mubr.f32.gmra.mxu0 %v700_v7 }
 0x207   :  { %v568_v1 = vpop.f32.mrf.mxu1 }
 0x208   :  { %v701_v2 = vmax.f32 %v567_v3, 0.0 }
 0x209   :  { %v571_v63 = vpop.f32.mrf.mxu1 }
 0x20a   :  { %v572_v0 = vadd.f32 %v2638_v23, %v571_v63  ;;  %1954 = vmatprep.mubr.f32.mxu0 %v701_v2 }
 0x20b   :  { %v573_v16 = vpop.f32.mrf.mxu1 }
 0x20c   :  { %v702_v20 = vmax.f32 %v572_v0, 0.0 }
 0x20d   :  { %v576_v12 = vpop.f32.mrf.mxu1 }
 0x20e   :  { %v577_v19 = vadd.f32 %v2638_v23, %v576_v12  ;;  %1955 = vmatmul.mubr.f32.gmra.mxu0 %v702_v20 }
 0x20f   :  { %v578_v8 = vpop.f32.mrf.mxu1 }
 0x210   :  { %v703_v15 = vmax.f32 %v577_v19, 0.0 }
 0x211   :  { %v581_v4 = vpop.f32.mrf.mxu1 }
 0x212   :  { %v582_v11 = vadd.f32 %v2638_v23, %v581_v4  ;;  %1957 = vmatprep.mubr.f32.mxu0 %v703_v15 }
 0x213   :  { %v583_v24 = vpop.f32.mrf.mxu1 }
 0x214   :  { %v704_v7 = vmax.f32 %v582_v11, 0.0 }
 0x215   :  { %v586_v1 = vpop.f32.mrf.mxu1 }
 0x216   :  { %v587_v3 = vadd.f32 %v2638_v23, %v586_v1  ;;  %1958 = vmatmul.mubr.f32.gmra.mxu0 %v704_v7 }
 0x217   :  { %v588_v63 = vpop.f32.mrf.mxu1 }
 0x218   :  { %v705_v2 = vmax.f32 %v587_v3, 0.0 }
 0x219   :  { %v591_v16 = vpop.f32.mrf.mxu1 }
 0x21a   :  { %v592_v0 = vadd.f32 %v2638_v23, %v591_v16  ;;  %1960 = vmatprep.mubr.f32.mxu0 %v705_v2 }
 0x21b   :  { %v593_v12 = vpop.f32.mrf.mxu1 }
 0x21c   :  { %v706_v20 = vmax.f32 %v592_v0, 0.0 }
 0x21d   :  { %v596_v8 = vpop.f32.mrf.mxu1 }
 0x21e   :  { %v597_v19 = vadd.f32 %v2638_v23, %v596_v8  ;;  %1961 = vmatmul.mubr.f32.gmra.mxu0 %v706_v20 }
 0x21f   :  { %v598_v4 = vpop.f32.mrf.mxu1 }
 0x220   :  { %v707_v15 = vmax.f32 %v597_v19, 0.0 }
 0x221   :  { %v601_v24 = vpop.f32.mrf.mxu1 }
 0x222   :  { %v602_v11 = vadd.f32 %v2638_v23, %v601_v24  ;;  %1963 = vmatprep.mubr.f32.mxu0 %v707_v15 }
 0x223   :  { %v603_v1 = vpop.f32.mrf.mxu1 }
 0x224   :  { %v708_v7 = vmax.f32 %v602_v11, 0.0 }
 0x225   :  { %v606_v63 = vpop.f32.mrf.mxu1 }
 0x226   :  { %v607_v3 = vadd.f32 %v2638_v23, %v606_v63  ;;  %1964 = vmatmul.mubr.f32.gmra.mxu0 %v708_v7 }
 0x227   :  { %v608_v16 = vpop.f32.mrf.mxu1 }
 0x228   :  { %v709_v2 = vmax.f32 %v607_v3, 0.0 }
 0x229   :  { %v611_v12 = vpop.f32.mrf.mxu1 }
 0x22a   :  { %v612_v0 = vadd.f32 %v2638_v23, %v611_v12  ;;  %1966 = vmatprep.mubr.f32.mxu0 %v709_v2 }
 0x22b   :  { %v613_v8 = vpop.f32.mrf.mxu1 }
 0x22c   :  { %v710_v20 = vmax.f32 %v612_v0, 0.0 }
 0x22d   :  { %v616_v4 = vpop.f32.mrf.mxu1 }
 0x22e   :  { %v617_v19 = vadd.f32 %v2638_v23, %v616_v4  ;;  %1967 = vmatmul.mubr.f32.gmra.mxu0 %v710_v20 }
 0x22f   :  { %v618_v24 = vpop.f32.mrf.mxu1 }
 0x230   :  { %v711_v15 = vmax.f32 %v617_v19, 0.0 }
 0x231   :  { %v621_v1 = vpop.f32.mrf.mxu1 }
 0x232   :  { %v622_v11 = vadd.f32 %v2638_v23, %v621_v1  ;;  %1969 = vmatprep.mubr.f32.mxu0 %v711_v15 }
 0x233   :  { %v623_v63 = vpop.f32.mrf.mxu1 }
 0x234   :  { %v712_v7 = vmax.f32 %v622_v11, 0.0 }
 0x235   :  { %v626_v16 = vpop.f32.mrf.mxu1 }
 0x236   :  { %v627_v3 = vadd.f32 %v2638_v23, %v626_v16  ;;  %1970 = vmatmul.mubr.f32.gmra.mxu0 %v712_v7 }
 0x237   :  { %v628_v12 = vpop.f32.mrf.mxu1 }
 0x238   :  { %v713_v2 = vmax.f32 %v627_v3, 0.0 }
 0x239   :  { %v631_v8 = vpop.f32.mrf.mxu1 }
 0x23a   :  { %v632_v0 = vadd.f32 %v2638_v23, %v631_v8  ;;  %1972 = vmatprep.mubr.f32.mxu0 %v713_v2 }
 0x23b   :  { %v633_v4 = vpop.f32.mrf.mxu1 }
 0x23c   :  { %v714_v20 = vmax.f32 %v632_v0, 0.0 }
 0x23d   :  { %v636_v24 = vpop.f32.mrf.mxu1 }
 0x23e   :  { %v637_v19 = vadd.f32 %v2638_v23, %v636_v24  ;;  %1973 = vmatmul.mubr.f32.gmra.mxu0 %v714_v20 }
 0x23f   :  { %v638_v1 = vpop.f32.mrf.mxu1 }
 0x240   :  { %v715_v15 = vmax.f32 %v637_v19, 0.0 }
 0x241   :  { %v641_v63 = vpop.f32.mrf.mxu1 }
 0x242   :  { %v642_v11 = vadd.f32 %v2638_v23, %v641_v63  ;;  %1975 = vmatprep.mubr.f32.mxu0 %v715_v15 }
 0x243   :  { %v643_v16 = vpop.f32.mrf.mxu1 }
 0x244   :  { %v716_v7 = vmax.f32 %v642_v11, 0.0 }
 0x245   :  { %v646_v12 = vpop.f32.mrf.mxu1 }
 0x246   :  { %v647_v3 = vadd.f32 %v2638_v23, %v646_v12  ;;  %1976 = vmatmul.mubr.f32.gmra.mxu0 %v716_v7 }
 0x247   :  { %v648_v8 = vpop.f32.mrf.mxu1 }
 0x248   :  { %v717_v2 = vmax.f32 %v647_v3, 0.0 }
 0x249   :  { %v651_v4 = vpop.f32.mrf.mxu1 }
 0x24a   :  { %v652_v0 = vadd.f32 %v2638_v23, %v651_v4  ;;  %1978 = vmatprep.mubr.f32.mxu0 %v717_v2 }
 0x24b   :  { %v653_v24 = vpop.f32.mrf.mxu1 }
 0x24c   :  { %v718_v20 = vmax.f32 %v652_v0, 0.0 }
 0x24d   :  { %v656_v1 = vpop.f32.mrf.mxu1 }
 0x24e   :  { %v657_v19 = vadd.f32 %v2638_v23, %v656_v1  ;;  %1979 = vmatmul.mubr.f32.gmra.mxu0 %v718_v20 }
 0x24f   :  { %v658_v63 = vpop.f32.mrf.mxu1 }
 0x250   :  { %v719_v15 = vmax.f32 %v657_v19, 0.0 }
 0x251   :  { %v661_v16 = vpop.f32.mrf.mxu1 }
 0x252   :  { %v662_v11 = vadd.f32 %v2638_v23, %v661_v16  ;;  %1981 = vmatprep.mubr.f32.mxu0 %v719_v15 }
 0x253   :  { %v663_v12 = vpop.f32.mrf.mxu1 }
 0x254   :  { %v720_v7 = vmax.f32 %v662_v11, 0.0 }
 0x255   :  { %v666_v8 = vpop.f32.mrf.mxu1 }
 0x256   :  { %v667_v3 = vadd.f32 %v2638_v23, %v666_v8  ;;  %1982 = vmatmul.mubr.f32.gmra.mxu0 %v720_v7 }
 0x257   :  { %v668_v4 = vpop.f32.mrf.mxu1 }
 0x258   :  { %v721_v2 = vmax.f32 %v667_v3, 0.0 }
 0x259   :  { %v671_v24 = vpop.f32.mrf.mxu1 }
 0x25a   :  { %v672_v0 = vadd.f32 %v2638_v23, %v671_v24  ;;  %1984 = vmatprep.mubr.f32.mxu0 %v721_v2 }
 0x25b   :  { %v673_v1 = vpop.f32.mrf.mxu1 }
 0x25c   :  { %v722_v20 = vmax.f32 %v672_v0, 0.0 }
 0x25d   :  { %v676_v63 = vpop.f32.mrf.mxu1 }
 0x25e   :  { %v677_v19 = vadd.f32 %v2638_v23, %v676_v63  ;;  %1985 = vmatmul.mubr.f32.gmra.mxu0 %v722_v20 }
 0x25f   :  { %v678_v16 = vpop.f32.mrf.mxu1 }
 0x260   :  { %v723_v15 = vmax.f32 %v677_v19, 0.0 }
 0x261   :  { %v681_v12 = vpop.f32.mrf.mxu1 }
 0x262   :  { %v682_v11 = vadd.f32 %v2638_v23, %v681_v12  ;;  %1987 = vmatprep.mubr.f32.mxu0 %v723_v15 }
 0x263   :  { %v683_v8 = vpop.f32.mrf.mxu1 }
 0x264   :  { %v724_v7 = vmax.f32 %v682_v11, 0.0 }
 0x265   :  { %v686_v4 = vpop.f32.mrf.mxu1 }
 0x266   :  { %v687_v3 = vadd.f32 %v2638_v23, %v686_v4  ;;  %1988 = vmatmul.mubr.f32.gmra.mxu0 %v724_v7 }
 0x267   :  { %v688_v24 = vpop.f32.mrf.mxu1 }
 0x268   :  { %v725_v2 = vmax.f32 %v687_v3, 0.0 }
 0x269   :  { %v691_v1 = vpop.f32.mrf.mxu1 }
 0x26a   :  { %v692_v0 = vadd.f32 %v2638_v23, %v691_v1  ;;  %1990 = vmatprep.mubr.f32.mxu0 %v725_v2 }
 0x26b   :  { %v693_v63 = vpop.f32.mrf.mxu1 }
 0x26c   :  { %v726_v20 = vmax.f32 %v692_v0, 0.0 }
 0x26e   :  { %1991 = vmatmul.mubr.f32.gmra.mxu0 %v726_v20  ;;  %v3409_v20 = vmov 0.0  }
 0x26f   :  { %1039 = vmatprep.mubr.f32.mxu0 %v2359_v34 }
 0x2b6   :  { %v2673_v19 = vpop.f32.mrf.mxu0 }
 0x2b8   :  { %v2675_v16 = vpop.f32.mrf.mxu0 }
 0x2be   :  { %v2677_v15 = vpop.f32.mrf.mxu0 }
 0x2c0   :  { %v2679_v12 = vpop.f32.mrf.mxu0 }
 0x2c6   :  { %v1953_v11 = vpop.f32.mrf.mxu0 }
 0x2c8   :  { %v829_v8 = vpop.f32.mrf.mxu0 }
 0x2ce   :  { %v1956_v7 = vpop.f32.mrf.mxu0 }
 0x2d0   :  { %v839_v4 = vpop.f32.mrf.mxu0 }
 0x2d6   :  { %v1959_v3 = vpop.f32.mrf.mxu0 }
 0x2d8   :  { %v849_v23 = vpop.f32.mrf.mxu0 }
 0x2de   :  { %v1962_v24 = vpop.f32.mrf.mxu0 }
 0x2e0   :  { %v859_v2 = vpop.f32.mrf.mxu0 }
 0x2e6   :  { %v1965_v1 = vpop.f32.mrf.mxu0 }
 0x2e8   :  { %v869_v0 = vpop.f32.mrf.mxu0 }
 0x2ee   :  { %v1968_v63 = vpop.f32.mrf.mxu0 }
 0x2ef   :  { %976 = vmatpush1.msra.mxu0 %v1968_v63  ;;  %2025 = vmatpush1.msra.mxu1 %v1968_v63 }
 0x2f0   :  { %v879_v34 = vpop.f32.mrf.mxu0  ;;  %977 = vmatprep.subr.mxu0 %v3409_v20  ;;  %1994 = vmatprep.subr.mxu1 %v3409_v20 }
 0x2f1   :  { %978 = vmatpush1.msra.mxu0 %v879_v34  ;;  %2026 = vmatpush1.msra.mxu1 %v879_v34 }
 0x2f2   :  { %979 = vmatprep.subr.mxu0 %v3409_v20  ;;  %1995 = vmatprep.subr.mxu1 %v3409_v20 }
 0x2f3   :  { %980 = vmatpush1.msra.mxu0 %v1965_v1  ;;  %2027 = vmatpush1.msra.mxu1 %v1965_v1 }
 0x2f4   :  { %981 = vmatprep.subr.mxu0 %v3409_v20  ;;  %1996 = vmatprep.subr.mxu1 %v3409_v20 }
 0x2f5   :  { %982 = vmatpush1.msra.mxu0 %v869_v0  ;;  %2028 = vmatpush1.msra.mxu1 %v869_v0 }
 0x2f6   :  { %983 = vmatprep.subr.mxu0 %v3409_v20  ;;  %1997 = vmatprep.subr.mxu1 %v3409_v20 }
 0x2f7   :  { %984 = vmatpush1.msra.mxu0 %v1962_v24  ;;  %2029 = vmatpush1.msra.mxu1 %v1962_v24 }
 0x2f8   :  { %985 = vmatprep.subr.mxu0 %v3409_v20  ;;  %1998 = vmatprep.subr.mxu1 %v3409_v20 }
 0x2f9   :  { %986 = vmatpush1.msra.mxu0 %v859_v2  ;;  %2030 = vmatpush1.msra.mxu1 %v859_v2 }
 0x2fa   :  { %987 = vmatprep.subr.mxu0 %v3409_v20  ;;  %1999 = vmatprep.subr.mxu1 %v3409_v20 }
 0x2fb   :  { %988 = vmatpush1.msra.mxu0 %v1959_v3  ;;  %2031 = vmatpush1.msra.mxu1 %v1959_v3  ;;  %v2701_v3 = vpop.f32.mrf.mxu0 }
 0x2fc   :  { %989 = vmatprep.subr.mxu0 %v3409_v20  ;;  %2000 = vmatprep.subr.mxu1 %v3409_v20 }
 0x2fd   :  { %990 = vmatpush1.msra.mxu0 %v849_v23  ;;  %2032 = vmatpush1.msra.mxu1 %v849_v23 }
 0x2fe   :  { %991 = vmatprep.subr.mxu0 %v3409_v20  ;;  %2001 = vmatprep.subr.mxu1 %v3409_v20 }
 0x2ff   :  { %992 = vmatpush1.msra.mxu0 %v1956_v7  ;;  %2033 = vmatpush1.msra.mxu1 %v1956_v7  ;;  %v2709_v7 = vpop.f32.mrf.mxu0 }
 0x300   :  { %993 = vmatprep.subr.mxu0 %v3409_v20  ;;  %2002 = vmatprep.subr.mxu1 %v3409_v20 }
 0x301   :  { %994 = vmatpush1.msra.mxu0 %v839_v4  ;;  %2034 = vmatpush1.msra.mxu1 %v839_v4 }
 0x302   :  { %995 = vmatprep.subr.mxu0 %v3409_v20  ;;  %2003 = vmatprep.subr.mxu1 %v3409_v20 }
 0x303   :  { %996 = vmatpush1.msra.mxu0 %v1953_v11  ;;  %2035 = vmatpush1.msra.mxu1 %v1953_v11  ;;  %v2715_v11 = vpop.f32.mrf.mxu0 }
 0x304   :  { %997 = vmatprep.subr.mxu0 %v3409_v20  ;;  %2004 = vmatprep.subr.mxu1 %v3409_v20 }
 0x305   :  { %998 = vmatpush1.msra.mxu0 %v829_v8  ;;  %2036 = vmatpush1.msra.mxu1 %v829_v8 }
 0x306   :  { %999 = vmatprep.subr.mxu0 %v3409_v20  ;;  %2005 = vmatprep.subr.mxu1 %v3409_v20 }
 0x307   :  { %1000 = vmatpush1.msra.mxu0 %v2677_v15  ;;  %2037 = vmatpush1.msra.mxu1 %v2677_v15  ;;  %v2725_v15 = vpop.f32.mrf.mxu0 }
 0x308   :  { %1001 = vmatprep.subr.mxu0 %v3409_v20  ;;  %2006 = vmatprep.subr.mxu1 %v3409_v20 }
 0x309   :  { %1002 = vmatpush1.msra.mxu0 %v2679_v12  ;;  %2038 = vmatpush1.msra.mxu1 %v2679_v12  ;;  %v1977_v12 = vpop.f32.mrf.mxu0 }
 0x30a   :  { %1003 = vmatprep.subr.mxu0 %v3409_v20  ;;  %2007 = vmatprep.subr.mxu1 %v3409_v20 }
 0x30b   :  { %1004 = vmatpush1.msra.mxu0 %v2673_v19  ;;  %2039 = vmatpush1.msra.mxu1 %v2673_v19  ;;  %v909_v8 = vpop.f32.mrf.mxu0 }
 0x30c   :  { %1005 = vmatprep.subr.mxu0 %v3409_v20  ;;  %2008 = vmatprep.subr.mxu1 %v3409_v20 }
 0x30d   :  { %1006 = vmatpush1.msra.mxu0 %v2675_v16  ;;  %2040 = vmatpush1.msra.mxu1 %v2675_v16 }
 0x30e   :  { %1007 = vmatprep.subr.mxu0 %v3409_v20  ;;  %2009 = vmatprep.subr.mxu1 %v3409_v20  ;;  %v1980_v4 = vpop.f32.mrf.mxu0 }
 0x310   :  { %v919_v23 = vpop.f32.mrf.mxu0 }
 0x316   :  { %v1983_v24 = vpop.f32.mrf.mxu0 }
 0x318   :  { %v929_v19 = vpop.f32.mrf.mxu0 }
 0x31e   :  { %v1986_v2 = vpop.f32.mrf.mxu0 }
 0x320   :  { %v939_v1 = vpop.f32.mrf.mxu0 }
 0x326   :  { %v1989_v0 = vpop.f32.mrf.mxu0 }
 0x328   :  { %v949_v63 = vpop.f32.mrf.mxu0 }
 0x32e   :  { %v1992_v34 = vpop.f32.mrf.mxu0 }
 0x32f   :  { %1008 = vmatpush2.msra.mxu0 %v1992_v34  ;;  %2041 = vmatpush2.msra.mxu1 %v1992_v34 }
 0x330   :  { %v959_v16 = vpop.f32.mrf.mxu0  ;;  %1009 = vmatprep.subr.mxu0 %v3409_v20  ;;  %2010 = vmatprep.subr.mxu1 %v3409_v20 }
 0x331   :  { %1010 = vmatpush2.msra.mxu0 %v959_v16  ;;  %2042 = vmatpush2.msra.mxu1 %v959_v16 }
 0x332   :  { %1011 = vmatprep.subr.mxu0 %v3409_v20  ;;  %2011 = vmatprep.subr.mxu1 %v3409_v20 }
 0x333   :  { %1012 = vmatpush2.msra.mxu0 %v1989_v0  ;;  %2043 = vmatpush2.msra.mxu1 %v1989_v0 }
 0x334   :  { %1013 = vmatprep.subr.mxu0 %v3409_v20  ;;  %2012 = vmatprep.subr.mxu1 %v3409_v20 }
 0x335   :  { %1014 = vmatpush2.msra.mxu0 %v949_v63  ;;  %2044 = vmatpush2.msra.mxu1 %v949_v63 }
 0x336   :  { %1015 = vmatprep.subr.mxu0 %v3409_v20  ;;  %2013 = vmatprep.subr.mxu1 %v3409_v20 }
 0x337   :  { %1016 = vmatpush2.msra.mxu0 %v1986_v2  ;;  %2045 = vmatpush2.msra.mxu1 %v1986_v2 }
 0x338   :  { %1017 = vmatprep.subr.mxu0 %v3409_v20  ;;  %2014 = vmatprep.subr.mxu1 %v3409_v20 }
 0x339   :  { %1018 = vmatpush2.msra.mxu0 %v939_v1  ;;  %2046 = vmatpush2.msra.mxu1 %v939_v1 }
 0x33a   :  { %1019 = vmatprep.subr.mxu0 %v3409_v20  ;;  %2015 = vmatprep.subr.mxu1 %v3409_v20 }
 0x33b   :  { %1020 = vmatpush2.msra.mxu0 %v1983_v24  ;;  %2047 = vmatpush2.msra.mxu1 %v1983_v24 }
 0x33c   :  { %1021 = vmatprep.subr.mxu0 %v3409_v20  ;;  %2016 = vmatprep.subr.mxu1 %v3409_v20 }
 0x33d   :  { %1022 = vmatpush2.msra.mxu0 %v929_v19  ;;  %2048 = vmatpush2.msra.mxu1 %v929_v19 }
 0x33e   :  { %1023 = vmatprep.subr.mxu0 %v3409_v20  ;;  %2017 = vmatprep.subr.mxu1 %v3409_v20 }
 0x33f   :  { %1024 = vmatpush2.msra.mxu0 %v1980_v4  ;;  %2049 = vmatpush2.msra.mxu1 %v1980_v4 }
 0x340   :  { %1025 = vmatprep.subr.mxu0 %v3409_v20  ;;  %2018 = vmatprep.subr.mxu1 %v3409_v20 }
 0x341   :  { %1026 = vmatpush2.msra.mxu0 %v919_v23  ;;  %2050 = vmatpush2.msra.mxu1 %v919_v23 }
 0x342   :  { %1027 = vmatprep.subr.mxu0 %v3409_v20  ;;  %2019 = vmatprep.subr.mxu1 %v3409_v20 }
 0x343   :  { %1028 = vmatpush2.msra.mxu0 %v1977_v12  ;;  %2051 = vmatpush2.msra.mxu1 %v1977_v12 }
 0x344   :  { %1029 = vmatprep.subr.mxu0 %v3409_v20  ;;  %2020 = vmatprep.subr.mxu1 %v3409_v20 }
 0x345   :  { %1030 = vmatpush2.msra.mxu0 %v909_v8  ;;  %2052 = vmatpush2.msra.mxu1 %v909_v8 }
 0x346   :  { %1031 = vmatprep.subr.mxu0 %v3409_v20  ;;  %2021 = vmatprep.subr.mxu1 %v3409_v20 }
 0x347   :  { %1032 = vmatpush2.msra.mxu0 %v2715_v11  ;;  %2053 = vmatpush2.msra.mxu1 %v2715_v11 }
 0x348   :  { %1033 = vmatprep.subr.mxu0 %v3409_v20  ;;  %2022 = vmatprep.subr.mxu1 %v3409_v20 }
 0x349   :  { %1034 = vmatpush2.msra.mxu0 %v2725_v15  ;;  %2054 = vmatpush2.msra.mxu1 %v2725_v15 }
 0x34a   :  { %1035 = vmatprep.subr.mxu0 %v3409_v20  ;;  %2023 = vmatprep.subr.mxu1 %v3409_v20 }
 0x34b   :  { %1036 = vmatpush2.msra.mxu0 %v2701_v3  ;;  %2055 = vmatpush2.msra.mxu1 %v2701_v3 }
 0x34c   :  { %1037 = vmatprep.subr.mxu0 %v3409_v20  ;;  %2024 = vmatprep.subr.mxu1 %v3409_v20 }
 0x34d   :  { %1038 = vmatpush2.msra.mxu0 %v2709_v7  ;;  %2056 = vmatpush2.msra.mxu1 %v2709_v7 }
 0x34e   :  { %1040 = vmatmul.mubr.f32.vlgmr.msra.gmra.mxu0 %v2403_v5  ;;  %1185 = vmatmul.mubr.f32.vlgmr.msra.gmra.mxu1 %v2620_v51  ;;  %v3411_v5 = vld [vmem:[#allocation9_spill] sm:$0xff] }
 0x34f   :  { %1044 = vmatprep.mubr.f32.mxu0 %v2406_v6  ;;  %1189 = vmatprep.mubr.f32.mxu1 %v2622_v54  ;;  %v3412_v6 = vld [vmem:[#allocation10_spill] sm:$0xff] }
 0x352   :  { %1045 = vmatmul.mubr.f32.gmra.mxu0 %v2417_v9  ;;  %1190 = vmatmul.mubr.f32.gmra.mxu1 %v2626_v55  ;;  %v3413_v9 = vld [vmem:[#allocation11_spill] sm:$0xff] }
 0x353   :  { %1049 = vmatprep.mubr.f32.mxu0 %v2419_v10  ;;  %1194 = vmatprep.mubr.f32.mxu1 %v2628_v58  ;;  %v3414_v10 = vld [vmem:[#allocation12_spill] sm:$0xff] }
 0x356   :  { %1050 = vmatmul.mubr.f32.gmra.mxu0 %v2430_v13  ;;  %1195 = vmatmul.mubr.f32.gmra.mxu1 %v2632_v33  ;;  %v3410_v33 = vld [vmem:[#allocation8_spill] sm:$0xff]  ;;  %v3415_v13 = vld [vmem:[#allocation13_spill] sm:$0xff] }
 0x357   :  { %1054 = vmatprep.mubr.f32.mxu0 %v2432_v14  ;;  %v3416_v14 = vld [vmem:[#allocation14_spill] sm:$0xff] }
 0x35a   :  { %1055 = vmatmul.mubr.f32.gmra.mxu0 %v2442_v17  ;;  %v3417_v17 = vld [vmem:[#allocation15_spill] sm:$0xff] }
 0x35b   :  { %1059 = vmatprep.mubr.f32.mxu0 %v2444_v18  ;;  %v3418_v18 = vld [vmem:[#allocation16_spill] sm:$0xff] }
 0x35e   :  { %1060 = vmatmul.mubr.f32.gmra.mxu0 %v2454_v21  ;;  %v3419_v21 = vld [vmem:[#allocation17_spill] sm:$0xff] }
 0x35f   :  { %1064 = vmatprep.mubr.f32.mxu0 %v2456_v22  ;;  %v3420_v22 = vld [vmem:[#allocation18_spill] sm:$0xff] }
 0x362   :  { %1065 = vmatmul.mubr.f32.gmra.mxu0 %v2466_v25  ;;  %v3421_v25 = vld [vmem:[#allocation19_spill] sm:$0xff] }
 0x363   :  { %1069 = vmatprep.mubr.f32.mxu0 %v2468_v26  ;;  %v3422_v26 = vld [vmem:[#allocation20_spill] sm:$0xff] }
 0x366   :  { %1070 = vmatmul.mubr.f32.gmra.mxu0 %v2472_v27  ;;  %v3423_v27 = vld [vmem:[#allocation21_spill] sm:$0xff] }
 0x367   :  { %1074 = vmatprep.mubr.f32.mxu0 %v2474_v28  ;;  %v3424_v28 = vld [vmem:[#allocation22_spill] sm:$0xff] }
 0x36a   :  { %1075 = vmatmul.mubr.f32.gmra.mxu0 %v2478_v29  ;;  %v1202_v29 = vlaneseq }
 0x36b   :  { %1079 = vmatprep.mubr.f32.mxu0 %v2480_v30 }
 0x36c   :  { %v2829_v30 = vand.u32 127, %v1202_v29 }
 0x36e   :  { %1080 = vmatmul.mubr.f32.gmra.mxu0 %v2484_v31  ;;  %v2834_v31 = vld [vmem:[%s3373_s5] ss:$0 sm:$0xff]  ;;  %vm1204_vm1 = vcmp.lt.s32.totalorder %v2829_v30, 32 }
 0x36f   :  { %1084 = vmatprep.mubr.f32.mxu0 %v2486_v32 }
 0x372   :  { %1085 = vmatmul.mubr.f32.gmra.mxu0 %v2490_v35 }
 0x373   :  { %1089 = vmatprep.mubr.f32.mxu0 %v2492_v36 }
 0x376   :  { %1090 = vmatmul.mubr.f32.gmra.mxu0 %v2496_v37 }
 0x377   :  { %1094 = vmatprep.mubr.f32.mxu0 %v2498_v38 }
 0x37a   :  { %1095 = vmatmul.mubr.f32.gmra.mxu0 %v2502_v39 }
 0x37b   :  { %1099 = vmatprep.mubr.f32.mxu0 %v2504_v40 }
 0x37e   :  { %1100 = vmatmul.mubr.f32.gmra.mxu0 %v2508_v41 }
 0x37f   :  { %1104 = vmatprep.mubr.f32.mxu0 %v2510_v42 }
 0x382   :  { %1105 = vmatmul.mubr.f32.gmra.mxu0 %v2514_v43 }
 0x383   :  { %1109 = vmatprep.mubr.f32.mxu0 %v2516_v44 }
 0x386   :  { %1110 = vmatmul.mubr.f32.gmra.mxu0 %v2520_v45 }
 0x387   :  { %1114 = vmatprep.mubr.f32.mxu0 %v2522_v46 }
 0x38a   :  { %1115 = vmatmul.mubr.f32.gmra.mxu0 %v2526_v47 }
 0x38b   :  { %1119 = vmatprep.mubr.f32.mxu0 %v2528_v48 }
 0x38e   :  { %1120 = vmatmul.mubr.f32.gmra.mxu0 %v2532_v49 }
 0x38f   :  { %1124 = vmatprep.mubr.f32.mxu0 %v2534_v50 }
 0x392   :  { %1125 = vmatmul.mubr.f32.gmra.mxu0 %v2541_v52 }
 0x393   :  { %1129 = vmatprep.mubr.f32.mxu0 %v2543_v53 }
 0x396   :  { %1130 = vmatmul.mubr.f32.gmra.mxu0 %v2553_v56 }
 0x397   :  { %1134 = vmatprep.mubr.f32.mxu0 %v2555_v57 }
 0x39a   :  { %1135 = vmatmul.mubr.f32.gmra.mxu0 %v2562_v59 }
 0x39b   :  { %1139 = vmatprep.mubr.f32.mxu0 %v2565_v60 }
 0x39e   :  { %1140 = vmatmul.mubr.f32.gmra.mxu0 %v2569_v61 }
 0x39f   :  { %1144 = vmatprep.mubr.f32.mxu0 %v2571_v62 }
 0x3a2   :  { %1145 = vmatmul.mubr.f32.gmra.mxu0 %v3410_v33 }
 0x3a3   :  { %1149 = vmatprep.mubr.f32.mxu0 %v3411_v5 }
 0x3a6   :  { %1150 = vmatmul.mubr.f32.gmra.mxu0 %v3412_v6 }
 0x3a7   :  { %1154 = vmatprep.mubr.f32.mxu0 %v3413_v9 }
 0x3aa   :  { %1155 = vmatmul.mubr.f32.gmra.mxu0 %v3414_v10 }
 0x3ab   :  { %1159 = vmatprep.mubr.f32.mxu0 %v3415_v13 }
 0x3ae   :  { %1160 = vmatmul.mubr.f32.gmra.mxu0 %v3416_v14 }
 0x3af   :  { %1164 = vmatprep.mubr.f32.mxu0 %v3417_v17 }
 0x3b2   :  { %1165 = vmatmul.mubr.f32.gmra.mxu0 %v3418_v18 }
 0x3b3   :  { %1169 = vmatprep.mubr.f32.mxu0 %v3419_v21 }
 0x3b6   :  { %1170 = vmatmul.mubr.f32.gmra.mxu0 %v3420_v22 }
 0x3b7   :  { %1174 = vmatprep.mubr.f32.mxu0 %v3421_v25 }
 0x3ba   :  { %1175 = vmatmul.mubr.f32.gmra.mxu0 %v3422_v26 }
 0x3bb   :  { %1179 = vmatprep.mubr.f32.mxu0 %v3423_v27 }
 0x3be   :  { %1180 = vmatmul.mubr.f32.gmra.mxu0 %v3424_v28 }
 0x40e   :  { %v1041_v32 = vpop.f32.mrf.mxu0  ;;  %v1186_v35 = vpop.f32.mrf.mxu1 }
 0x40f   :  { %v2838_v36 = vadd.f32 %v2834_v31, %v1041_v32  ;;  %v2841_v37 = vadd.f32 %v2834_v31, %v1186_v35 }
 0x410   :  { %v1043_v38 = vpop.f32.mrf.mxu0  ;;  %v1188_v39 = vpop.f32.mrf.mxu1 }
 0x411   :  { %v1234_v40 = vsel %vm1204_vm1, %v2841_v37, 0.0  ;;  %v1205_v41 = vsel %vm1204_vm1, %v2838_v36, 0.0 }
 0x412   :  { %1295 = vadd.xlane.f32.xlu1 %v1234_v40  ;;  %v1046_v42 = vpop.f32.mrf.mxu0  ;;  %1237 = vadd.xlane.f32.xlu0 %v1205_v41  ;;  %v2849_v43 = vpop.f32.mrf.mxu1 }
 0x413   :  { %v2852_v44 = vadd.f32 %v2834_v31, %v1046_v42 }
 0x414   :  { %v1048_v45 = vpop.f32.mrf.mxu0  ;;  %v1193_v46 = vpop.f32.mrf.mxu1 }
 0x415   :  { %v1206_v47 = vsel %vm1204_vm1, %v2852_v44, 0.0 }
 0x416   :  { %v1051_v48 = vpop.f32.mrf.mxu0  ;;  %1239 = vadd.xlane.f32.xlu0 %v1206_v47  ;;  %v2857_v49 = vpop.f32.mrf.mxu1 }
 0x417   :  { %v2860_v50 = vadd.f32 %v2834_v31, %v1051_v48 }
 0x418   :  { %v1053_v52 = vpop.f32.mrf.mxu0  ;;  %v1198_v53 = vpop.f32.mrf.mxu1 }
 0x419   :  { %v1207_v56 = vsel %vm1204_vm1, %v2860_v50, 0.0 }
 0x41a   :  { %v1056_v57 = vpop.f32.mrf.mxu0  ;;  %1241 = vadd.xlane.f32.xlu1 %v1207_v56 }
 0x41b   :  { %v2866_v59 = vadd.f32 %v2834_v31, %v1056_v57 }
 0x41c   :  { %v1058_v60 = vpop.f32.mrf.mxu0 }
 0x41d   :  { %v1208_v61 = vsel %vm1204_vm1, %v2866_v59, 0.0 }
 0x41e   :  { %v1061_v62 = vpop.f32.mrf.mxu0  ;;  %1243 = vadd.xlane.f32.xlu1 %v1208_v61 }
 0x41f   :  { %v2872_v51 = vadd.f32 %v2834_v31, %v1061_v62 }
 0x420   :  { %v1063_v54 = vpop.f32.mrf.mxu0 }
 0x421   :  { %v1209_v55 = vsel %vm1204_vm1, %v2872_v51, 0.0 }
 0x422   :  { %v1066_v58 = vpop.f32.mrf.mxu0  ;;  %1245 = vadd.xlane.f32.xlu0 %v1209_v55 }
 0x423   :  { %v2878_v20 = vadd.f32 %v2834_v31, %v1066_v58 }
 0x424   :  { %v1068_v3 = vpop.f32.mrf.mxu0 }
 0x425   :  { %v1210_v7 = vsel %vm1204_vm1, %v2878_v20, 0.0 }
 0x426   :  { %v1071_v11 = vpop.f32.mrf.mxu0  ;;  %1247 = vadd.xlane.f32.xlu1 %v1210_v7 }
 0x427   :  { %v2884_v15 = vadd.f32 %v2834_v31, %v1071_v11 }
 0x428   :  { %v1073_v12 = vpop.f32.mrf.mxu0 }
 0x429   :  { %v1211_v8 = vsel %vm1204_vm1, %v2884_v15, 0.0 }
 0x42a   :  { %v1076_v4 = vpop.f32.mrf.mxu0  ;;  %1249 = vadd.xlane.f32.xlu0 %v1211_v8 }
 0x42b   :  { %v2890_v23 = vadd.f32 %v2834_v31, %v1076_v4 }
 0x42c   :  { %v1078_v24 = vpop.f32.mrf.mxu0 }
 0x42d   :  { %v1212_v19 = vsel %vm1204_vm1, %v2890_v23, 0.0 }
 0x42e   :  { %v1081_v2 = vpop.f32.mrf.mxu0  ;;  %1251 = vadd.xlane.f32.xlu1 %v1212_v19 }
 0x42f   :  { %v2896_v1 = vadd.f32 %v2834_v31, %v1081_v2 }
 0x430   :  { %v1083_v0 = vpop.f32.mrf.mxu0 }
 0x431   :  { %v1213_v63 = vsel %vm1204_vm1, %v2896_v1, 0.0 }
 0x432   :  { %v1086_v34 = vpop.f32.mrf.mxu0  ;;  %1253 = vadd.xlane.f32.xlu0 %v1213_v63 }
 0x433   :  { %v2902_v16 = vadd.f32 %v2834_v31, %v1086_v34 }
 0x434   :  { %v1088_v33 = vpop.f32.mrf.mxu0 }
 0x435   :  { %v1214_v5 = vsel %vm1204_vm1, %v2902_v16, 0.0 }
 0x436   :  { %v1091_v6 = vpop.f32.mrf.mxu0  ;;  %1255 = vadd.xlane.f32.xlu1 %v1214_v5 }
 0x437   :  { %v2908_v9 = vadd.f32 %v2834_v31, %v1091_v6 }
 0x438   :  { %v1093_v10 = vpop.f32.mrf.mxu0 }
 0x439   :  { %v1215_v13 = vsel %vm1204_vm1, %v2908_v9, 0.0 }
 0x43a   :  { %v1096_v14 = vpop.f32.mrf.mxu0  ;;  %1257 = vadd.xlane.f32.xlu0 %v1215_v13 }
 0x43b   :  { %v2914_v17 = vadd.f32 %v2834_v31, %v1096_v14 }
 0x43c   :  { %v1098_v18 = vpop.f32.mrf.mxu0 }
 0x43d   :  { %v1216_v21 = vsel %vm1204_vm1, %v2914_v17, 0.0 }
 0x43e   :  { %v1101_v22 = vpop.f32.mrf.mxu0  ;;  %1259 = vadd.xlane.f32.xlu1 %v1216_v21 }
 0x43f   :  { %v2920_v25 = vadd.f32 %v2834_v31, %v1101_v22 }
 0x440   :  { %v1103_v26 = vpop.f32.mrf.mxu0 }
 0x441   :  { %v1217_v27 = vsel %vm1204_vm1, %v2920_v25, 0.0 }
 0x442   :  { %v1106_v28 = vpop.f32.mrf.mxu0  ;;  %1261 = vadd.xlane.f32.xlu0 %v1217_v27 }
 0x443   :  { %v2926_v29 = vadd.f32 %v2834_v31, %v1106_v28 }
 0x444   :  { %v1108_v32 = vpop.f32.mrf.mxu0 }
 0x445   :  { %v1218_v35 = vsel %vm1204_vm1, %v2926_v29, 0.0 }
 0x446   :  { %v1111_v38 = vpop.f32.mrf.mxu0  ;;  %1263 = vadd.xlane.f32.xlu1 %v1218_v35 }
 0x447   :  { %v2932_v39 = vadd.f32 %v2834_v31, %v1111_v38 }
 0x448   :  { %v1113_v40 = vpop.f32.mrf.mxu0 }
 0x449   :  { %v1219_v41 = vsel %vm1204_vm1, %v2932_v39, 0.0 }
 0x44a   :  { %v1116_v42 = vpop.f32.mrf.mxu0  ;;  %1265 = vadd.xlane.f32.xlu0 %v1219_v41 }
 0x44b   :  { %v2938_v45 = vadd.f32 %v2834_v31, %v1116_v42 }
 0x44c   :  { %v1118_v46 = vpop.f32.mrf.mxu0 }
 0x44d   :  { %v1220_v47 = vsel %vm1204_vm1, %v2938_v45, 0.0 }
 0x44e   :  { %v1121_v48 = vpop.f32.mrf.mxu0  ;;  %1267 = vadd.xlane.f32.xlu1 %v1220_v47 }
 0x44f   :  { %v2944_v52 = vadd.f32 %v2834_v31, %v1121_v48 }
 0x450   :  { %v1123_v53 = vpop.f32.mrf.mxu0 }
 0x451   :  { %v1221_v56 = vsel %vm1204_vm1, %v2944_v52, 0.0 }
 0x452   :  { %v1126_v57 = vpop.f32.mrf.mxu0  ;;  %1269 = vadd.xlane.f32.xlu0 %v1221_v56 }
 0x453   :  { %v2950_v60 = vadd.f32 %v2834_v31, %v1126_v57  ;;  %v3014_v57 = vadd.f32 %v2834_v31, %v2857_v49 }
 0x454   :  { %v1128_v61 = vpop.f32.mrf.mxu0 }
 0x455   :  { %v1222_v62 = vsel %vm1204_vm1, %v2950_v60, 0.0 }
 0x456   :  { %v1131_v54 = vpop.f32.mrf.mxu0  ;;  %1271 = vadd.xlane.f32.xlu1 %v1222_v62 }
 0x457   :  { %v2956_v55 = vadd.f32 %v2834_v31, %v1131_v54 }
 0x458   :  { %v1133_v58 = vpop.f32.mrf.mxu0 }
 0x459   :  { %v1223_v3 = vsel %vm1204_vm1, %v2956_v55, 0.0 }
 0x45a   :  { %v1136_v7 = vpop.f32.mrf.mxu0  ;;  %1273 = vadd.xlane.f32.xlu0 %v1223_v3  ;;  %v1236_v3 = vsel %vm1204_vm1, %v3014_v57, 0.0 }
 0x45b   :  { %v2962_v11 = vadd.f32 %v2834_v31, %v1136_v7 }
 0x45c   :  { %v1138_v12 = vpop.f32.mrf.mxu0 }
 0x45d   :  { %v1224_v8 = vsel %vm1204_vm1, %v2962_v11, 0.0  ;;  %v3027_v12 = vadd.f32 %v2834_v31, %v2849_v43 }
 0x45e   :  { %v1141_v4 = vpop.f32.mrf.mxu0  ;;  %1275 = vadd.xlane.f32.xlu1 %v1224_v8 }
 0x45f   :  { %v2968_v24 = vadd.f32 %v2834_v31, %v1141_v4  ;;  %v1235_v8 = vsel %vm1204_vm1, %v3027_v12, 0.0 }
 0x460   :  { %v1143_v19 = vpop.f32.mrf.mxu0 }
 0x461   :  { %v1225_v2 = vsel %vm1204_vm1, %v2968_v24, 0.0 }
 0x462   :  { %v1146_v0 = vpop.f32.mrf.mxu0  ;;  %1277 = vadd.xlane.f32.xlu0 %v1225_v2 }
 0x463   :  { %v2974_v63 = vadd.f32 %v2834_v31, %v1146_v0 }
 0x464   :  { %v1148_v34 = vpop.f32.mrf.mxu0 }
 0x465   :  { %v1226_v33 = vsel %vm1204_vm1, %v2974_v63, 0.0 }
 0x466   :  { %v1151_v5 = vpop.f32.mrf.mxu0  ;;  %1279 = vadd.xlane.f32.xlu1 %v1226_v33 }
 0x467   :  { %v2980_v6 = vadd.f32 %v2834_v31, %v1151_v5 }
 0x468   :  { %v1153_v10 = vpop.f32.mrf.mxu0 }
 0x469   :  { %v1227_v13 = vsel %vm1204_vm1, %v2980_v6, 0.0 }
 0x46a   :  { %v1156_v14 = vpop.f32.mrf.mxu0  ;;  %1281 = vadd.xlane.f32.xlu0 %v1227_v13 }
 0x46b   :  { %v2986_v18 = vadd.f32 %v2834_v31, %v1156_v14 }
 0x46c   :  { %v1158_v21 = vpop.f32.mrf.mxu0 }
 0x46d   :  { %v1228_v22 = vsel %vm1204_vm1, %v2986_v18, 0.0 }
 0x46e   :  { %v1161_v26 = vpop.f32.mrf.mxu0  ;;  %1283 = vadd.xlane.f32.xlu1 %v1228_v22 }
 0x46f   :  { %v2992_v27 = vadd.f32 %v2834_v31, %v1161_v26 }
 0x470   :  { %v1163_v28 = vpop.f32.mrf.mxu0 }
 0x471   :  { %v1229_v32 = vsel %vm1204_vm1, %v2992_v27, 0.0 }
 0x472   :  { %v1166_v35 = vpop.f32.mrf.mxu0  ;;  %1285 = vadd.xlane.f32.xlu0 %v1229_v32 }
 0x473   :  { %v2998_v38 = vadd.f32 %v2834_v31, %v1166_v35 }
 0x474   :  { %v1168_v40 = vpop.f32.mrf.mxu0 }
 0x475   :  { %v1230_v41 = vsel %vm1204_vm1, %v2998_v38, 0.0 }
 0x476   :  { %v1171_v42 = vpop.f32.mrf.mxu0  ;;  %1287 = vadd.xlane.f32.xlu1 %v1230_v41 }
 0x477   :  { %v3004_v46 = vadd.f32 %v2834_v31, %v1171_v42 }
 0x478   :  { %v1173_v47 = vpop.f32.mrf.mxu0 }
 0x479   :  { %v1231_v48 = vsel %vm1204_vm1, %v3004_v46, 0.0 }
 0x47a   :  { %v1176_v53 = vpop.f32.mrf.mxu0  ;;  %1289 = vadd.xlane.f32.xlu0 %v1231_v48 }
 0x47b   :  { %v3010_v56 = vadd.f32 %v2834_v31, %v1176_v53 }
 0x47c   :  { %v1178_v61 = vpop.f32.mrf.mxu0 }
 0x47d   :  { %v1232_v62 = vsel %vm1204_vm1, %v3010_v56, 0.0 }
 0x47e   :  { %v1181_v54 = vpop.f32.mrf.mxu0  ;;  %1291 = vadd.xlane.f32.xlu1 %v1232_v62 }
 0x47f   :  { %v3020_v58 = vadd.f32 %v2834_v31, %v1181_v54 }
 0x480   :  { %v1183_v7 = vpop.f32.mrf.mxu0 }
 0x481   :  { %v1233_v49 = vsel %vm1204_vm1, %v3020_v58, 0.0 }
 0x482   :  { %1299 = vadd.xlane.f32.xlu1 %v1236_v3  ;;  %1293 = vadd.xlane.f32.xlu0 %v1233_v49 }
 0x486   :  { %1297 = vadd.xlane.f32.xlu0 %v1235_v8 }
 0x49b   :  { %v1296_v4 = vpop.xlane.xlu1 %1295  ;;  %v1238_v19 = vpop.xlane.xlu0 %1237 }
 0x49c   :  { %v1330_v2 = vmul.f32 0.03125, %v1296_v4  ;;  %v1301_v0 = vmul.f32 0.03125, %v1238_v19 }
 0x49e   :  { %v1362_v34 = vsub.f32 %v2841_v37, %v1330_v2  ;;  %v1333_v31 = vsub.f32 %v2838_v36, %v1301_v0 }
 0x49f   :  { %v1240_v43 = vpop.xlane.xlu0 %1239 }
 0x4a0   :  { %v1302_v33 = vmul.f32 0.03125, %v1240_v43  ;;  %v3039_v5 = vsel %vm1204_vm1, %v1362_v34, 0.0  ;;  %v3043_v10 = vsel %vm1204_vm1, %v1333_v31, 0.0 }
 0x4a1   :  { %v1426_v13 = vmul.f32 %v3039_v5, %v3039_v5  ;;  %v1397_v14 = vmul.f32 %v3043_v10, %v3043_v10 }
 0x4a2   :  { %v1334_v37 = vsub.f32 %v2852_v44, %v1302_v33 }
 0x4a3   :  { %1487 = vadd.xlane.f32.xlu1 %v1426_v13  ;;  %v1242_v36 = vpop.xlane.xlu1 %1241  ;;  %1429 = vadd.xlane.f32.xlu0 %v1397_v14 }
 0x4a4   :  { %v1303_v21 = vmul.f32 0.03125, %v1242_v36  ;;  %v3052_v22 = vsel %vm1204_vm1, %v1334_v37, 0.0 }
 0x4a5   :  { %v1398_v26 = vmul.f32 %v3052_v22, %v3052_v22 }
 0x4a6   :  { %v1335_v28 = vsub.f32 %v2860_v50, %v1303_v21 }
 0x4a7   :  { %v1244_v32 = vpop.xlane.xlu1 %1243  ;;  %1431 = vadd.xlane.f32.xlu1 %v1398_v26 }
 0x4a8   :  { %v1304_v35 = vmul.f32 0.03125, %v1244_v32  ;;  %v3059_v40 = vsel %vm1204_vm1, %v1335_v28, 0.0 }
 0x4a9   :  { %v1399_v44 = vmul.f32 %v3059_v40, %v3059_v40 }
 0x4aa   :  { %v1336_v41 = vsub.f32 %v2866_v59, %v1304_v35 }
 0x4ab   :  { %1433 = vadd.xlane.f32.xlu0 %v1399_v44  ;;  %v1246_v42 = vpop.xlane.xlu0 %1245 }
 0x4ac   :  { %v1305_v47 = vmul.f32 0.03125, %v1246_v42  ;;  %v3066_v48 = vsel %vm1204_vm1, %v1336_v41, 0.0 }
 0x4ad   :  { %v1400_v50 = vmul.f32 %v3066_v48, %v3066_v48 }
 0x4ae   :  { %v1337_v53 = vsub.f32 %v2872_v51, %v1305_v47 }
 0x4af   :  { %v1248_v61 = vpop.xlane.xlu1 %1247  ;;  %1435 = vadd.xlane.f32.xlu1 %v1400_v50 }
 0x4b0   :  { %v1306_v62 = vmul.f32 0.03125, %v1248_v61  ;;  %v3073_v54 = vsel %vm1204_vm1, %v1337_v53, 0.0 }
 0x4b1   :  { %v1401_v59 = vmul.f32 %v3073_v54, %v3073_v54 }
 0x4b2   :  { %v1338_v3 = vsub.f32 %v2878_v20, %v1306_v62 }
 0x4b3   :  { %1437 = vadd.xlane.f32.xlu0 %v1401_v59  ;;  %v1250_v7 = vpop.xlane.xlu0 %1249 }
 0x4b4   :  { %v1307_v49 = vmul.f32 0.03125, %v1250_v7  ;;  %v3080_v8 = vsel %vm1204_vm1, %v1338_v3, 0.0 }
 0x4b5   :  { %v1402_v51 = vmul.f32 %v3080_v8, %v3080_v8 }
 0x4b6   :  { %v1339_v4 = vsub.f32 %v2884_v15, %v1307_v49 }
 0x4b7   :  { %v1252_v19 = vpop.xlane.xlu1 %1251  ;;  %1439 = vadd.xlane.f32.xlu1 %v1402_v51 }
 0x4b8   :  { %v1308_v2 = vmul.f32 0.03125, %v1252_v19  ;;  %v3087_v0 = vsel %vm1204_vm1, %v1339_v4, 0.0 }
 0x4b9   :  { %v1403_v20 = vmul.f32 %v3087_v0, %v3087_v0 }
 0x4ba   :  { %v1340_v34 = vsub.f32 %v2890_v23, %v1308_v2 }
 0x4bb   :  { %1441 = vadd.xlane.f32.xlu0 %v1403_v20  ;;  %v1254_v31 = vpop.xlane.xlu0 %1253 }
 0x4bc   :  { %v1309_v43 = vmul.f32 0.03125, %v1254_v31  ;;  %v3094_v33 = vsel %vm1204_vm1, %v1340_v34, 0.0 }
 0x4bd   :  { %v1404_v15 = vmul.f32 %v3094_v33, %v3094_v33 }
 0x4be   :  { %v1341_v13 = vsub.f32 %v2896_v1, %v1309_v43 }
 0x4bf   :  { %v1256_v14 = vpop.xlane.xlu1 %1255  ;;  %1443 = vadd.xlane.f32.xlu1 %v1404_v15 }
 0x4c0   :  { %v1310_v37 = vmul.f32 0.03125, %v1256_v14  ;;  %v3101_v36 = vsel %vm1204_vm1, %v1341_v13, 0.0 }
 0x4c1   :  { %v1405_v23 = vmul.f32 %v3101_v36, %v3101_v36 }
 0x4c2   :  { %v1342_v21 = vsub.f32 %v2902_v16, %v1310_v37 }
 0x4c3   :  { %1445 = vadd.xlane.f32.xlu0 %v1405_v23  ;;  %v1258_v26 = vpop.xlane.xlu0 %1257 }
 0x4c4   :  { %v1311_v28 = vmul.f32 0.03125, %v1258_v26  ;;  %v3108_v32 = vsel %vm1204_vm1, %v1342_v21, 0.0 }
 0x4c5   :  { %v1406_v1 = vmul.f32 %v3108_v32, %v3108_v32 }
 0x4c6   :  { %v1343_v35 = vsub.f32 %v2908_v9, %v1311_v28 }
 0x4c7   :  { %v1260_v44 = vpop.xlane.xlu1 %1259  ;;  %1447 = vadd.xlane.f32.xlu1 %v1406_v1 }
 0x4c8   :  { %v1312_v41 = vmul.f32 0.03125, %v1260_v44  ;;  %v3115_v42 = vsel %vm1204_vm1, %v1343_v35, 0.0 }
 0x4c9   :  { %v1407_v16 = vmul.f32 %v3115_v42, %v3115_v42 }
 0x4ca   :  { %v1344_v47 = vsub.f32 %v2914_v17, %v1312_v41 }
 0x4cb   :  { %1449 = vadd.xlane.f32.xlu0 %v1407_v16  ;;  %v1262_v50 = vpop.xlane.xlu0 %1261 }
 0x4cc   :  { %v1313_v53 = vmul.f32 0.03125, %v1262_v50  ;;  %v3122_v61 = vsel %vm1204_vm1, %v1344_v47, 0.0 }
 0x4cd   :  { %v1408_v9 = vmul.f32 %v3122_v61, %v3122_v61 }
 0x4ce   :  { %v1345_v62 = vsub.f32 %v2920_v25, %v1313_v53 }
 0x4cf   :  { %v1264_v59 = vpop.xlane.xlu1 %1263  ;;  %1451 = vadd.xlane.f32.xlu1 %v1408_v9 }
 0x4d0   :  { %v1314_v3 = vmul.f32 0.03125, %v1264_v59  ;;  %v3129_v7 = vsel %vm1204_vm1, %v1345_v62, 0.0 }
 0x4d1   :  { %v1409_v17 = vmul.f32 %v3129_v7, %v3129_v7 }
 0x4d2   :  { %v1346_v49 = vsub.f32 %v2926_v29, %v1314_v3 }
 0x4d3   :  { %1453 = vadd.xlane.f32.xlu0 %v1409_v17  ;;  %v1266_v51 = vpop.xlane.xlu0 %1265 }
 0x4d4   :  { %v1315_v4 = vmul.f32 0.03125, %v1266_v51  ;;  %v3136_v19 = vsel %vm1204_vm1, %v1346_v49, 0.0 }
 0x4d5   :  { %v1410_v25 = vmul.f32 %v3136_v19, %v3136_v19 }
 0x4d6   :  { %v1347_v2 = vsub.f32 %v2932_v39, %v1315_v4 }
 0x4d7   :  { %v1268_v20 = vpop.xlane.xlu1 %1267  ;;  %1455 = vadd.xlane.f32.xlu1 %v1410_v25 }
 0x4d8   :  { %v1316_v34 = vmul.f32 0.03125, %v1268_v20  ;;  %v3143_v31 = vsel %vm1204_vm1, %v1347_v2, 0.0 }
 0x4d9   :  { %v1411_v29 = vmul.f32 %v3143_v31, %v3143_v31 }
 0x4da   :  { %v1348_v43 = vsub.f32 %v2938_v45, %v1316_v34 }
 0x4db   :  { %1457 = vadd.xlane.f32.xlu0 %v1411_v29  ;;  %v1270_v15 = vpop.xlane.xlu0 %1269 }
 0x4dc   :  { %v1317_v13 = vmul.f32 0.03125, %v1270_v15  ;;  %v3150_v14 = vsel %vm1204_vm1, %v1348_v43, 0.0 }
 0x4dd   :  { %v1412_v39 = vmul.f32 %v3150_v14, %v3150_v14 }
 0x4de   :  { %v1349_v37 = vsub.f32 %v2944_v52, %v1317_v13 }
 0x4df   :  { %v1272_v23 = vpop.xlane.xlu1 %1271  ;;  %1459 = vadd.xlane.f32.xlu1 %v1412_v39 }
 0x4e0   :  { %v1318_v21 = vmul.f32 0.03125, %v1272_v23  ;;  %v3157_v26 = vsel %vm1204_vm1, %v1349_v37, 0.0 }
 0x4e1   :  { %v1413_v45 = vmul.f32 %v3157_v26, %v3157_v26 }
 0x4e2   :  { %v1350_v28 = vsub.f32 %v2950_v60, %v1318_v21 }
 0x4e3   :  { %1461 = vadd.xlane.f32.xlu0 %v1413_v45  ;;  %v1274_v1 = vpop.xlane.xlu0 %1273 }
 0x4e4   :  { %v1319_v35 = vmul.f32 0.03125, %v1274_v1  ;;  %v3164_v44 = vsel %vm1204_vm1, %v1350_v28, 0.0 }
 0x4e5   :  { %v1414_v52 = vmul.f32 %v3164_v44, %v3164_v44 }
 0x4e6   :  { %v1351_v41 = vsub.f32 %v2956_v55, %v1319_v35 }
 0x4e7   :  { %v1276_v16 = vpop.xlane.xlu1 %1275  ;;  %1463 = vadd.xlane.f32.xlu1 %v1414_v52 }
 0x4e8   :  { %v1320_v47 = vmul.f32 0.03125, %v1276_v16  ;;  %v3171_v50 = vsel %vm1204_vm1, %v1351_v41, 0.0 }
 0x4e9   :  { %v1415_v60 = vmul.f32 %v3171_v50, %v3171_v50 }
 0x4ea   :  { %v1352_v53 = vsub.f32 %v2962_v11, %v1320_v47 }
 0x4eb   :  { %1465 = vadd.xlane.f32.xlu0 %v1415_v60  ;;  %v1278_v9 = vpop.xlane.xlu0 %1277 }
 0x4ec   :  { %v1321_v62 = vmul.f32 0.03125, %v1278_v9  ;;  %v3178_v59 = vsel %vm1204_vm1, %v1352_v53, 0.0 }
 0x4ed   :  { %v1416_v55 = vmul.f32 %v3178_v59, %v3178_v59 }
 0x4ee   :  { %v1353_v3 = vsub.f32 %v2968_v24, %v1321_v62 }
 0x4ef   :  { %v1280_v17 = vpop.xlane.xlu1 %1279  ;;  %1467 = vadd.xlane.f32.xlu1 %v1416_v55 }
 0x4f0   :  { %v1322_v49 = vmul.f32 0.03125, %v1280_v17  ;;  %v3185_v51 = vsel %vm1204_vm1, %v1353_v3, 0.0 }
 0x4f1   :  { %v1417_v11 = vmul.f32 %v3185_v51, %v3185_v51 }
 0x4f2   :  { %v1354_v4 = vsub.f32 %v2974_v63, %v1322_v49 }
 0x4f3   :  { %1469 = vadd.xlane.f32.xlu0 %v1417_v11  ;;  %v1282_v25 = vpop.xlane.xlu0 %1281 }
 0x4f4   :  { %v1323_v2 = vmul.f32 0.03125, %v1282_v25  ;;  %v3192_v20 = vsel %vm1204_vm1, %v1354_v4, 0.0 }
 0x4f5   :  { %v1418_v24 = vmul.f32 %v3192_v20, %v3192_v20 }
 0x4f6   :  { %v1355_v34 = vsub.f32 %v2980_v6, %v1323_v2 }
 0x4f7   :  { %v1284_v29 = vpop.xlane.xlu1 %1283  ;;  %1471 = vadd.xlane.f32.xlu1 %v1418_v24 }
 0x4f8   :  { %v1324_v43 = vmul.f32 0.03125, %v1284_v29  ;;  %v3199_v15 = vsel %vm1204_vm1, %v1355_v34, 0.0 }
 0x4f9   :  { %v1419_v63 = vmul.f32 %v3199_v15, %v3199_v15 }
 0x4fa   :  { %v1356_v13 = vsub.f32 %v2986_v18, %v1324_v43 }
 0x4fb   :  { %1473 = vadd.xlane.f32.xlu0 %v1419_v63  ;;  %v1286_v39 = vpop.xlane.xlu0 %1285 }
 0x4fc   :  { %v1325_v37 = vmul.f32 0.03125, %v1286_v39  ;;  %v3206_v23 = vsel %vm1204_vm1, %v1356_v13, 0.0 }
 0x4fd   :  { %v1420_v6 = vmul.f32 %v3206_v23, %v3206_v23 }
 0x4fe   :  { %v1357_v21 = vsub.f32 %v2992_v27, %v1325_v37 }
 0x4ff   :  { %v1288_v45 = vpop.xlane.xlu1 %1287  ;;  %1475 = vadd.xlane.f32.xlu1 %v1420_v6 }
 0x500   :  { %v1326_v28 = vmul.f32 0.03125, %v1288_v45  ;;  %v3213_v1 = vsel %vm1204_vm1, %v1357_v21, 0.0 }
 0x501   :  { %v1421_v18 = vmul.f32 %v3213_v1, %v3213_v1 }
 0x502   :  { %v1358_v35 = vsub.f32 %v2998_v38, %v1326_v28 }
 0x503   :  { %1477 = vadd.xlane.f32.xlu0 %v1421_v18  ;;  %v1290_v52 = vpop.xlane.xlu0 %1289 }
 0x504   :  { %v1327_v41 = vmul.f32 0.03125, %v1290_v52  ;;  %v3220_v16 = vsel %vm1204_vm1, %v1358_v35, 0.0 }
 0x505   :  { %v1422_v27 = vmul.f32 %v3220_v16, %v3220_v16 }
 0x506   :  { %v1359_v47 = vsub.f32 %v3004_v46, %v1327_v41 }
 0x507   :  { %v1292_v60 = vpop.xlane.xlu1 %1291  ;;  %1479 = vadd.xlane.f32.xlu1 %v1422_v27 }
 0x508   :  { %v1328_v53 = vmul.f32 0.03125, %v1292_v60  ;;  %v3227_v9 = vsel %vm1204_vm1, %v1359_v47, 0.0 }
 0x509   :  { %v1423_v38 = vmul.f32 %v3227_v9, %v3227_v9 }
 0x50a   :  { %v1360_v62 = vsub.f32 %v3010_v56, %v1328_v53 }
 0x50b   :  { %v1300_v55 = vpop.xlane.xlu1 %1299  ;;  %1481 = vadd.xlane.f32.xlu0 %v1423_v38  ;;  %v1294_v3 = vpop.xlane.xlu0 %1293 }
 0x50c   :  { %v1332_v17 = vmul.f32 0.03125, %v1300_v55  ;;  %v1329_v49 = vmul.f32 0.03125, %v1294_v3  ;;  %v3234_v46 = vsel %vm1204_vm1, %v1360_v62, 0.0  ;;  %v3262_v62 = vld [vmem:[%s3374_s6] ss:$0 sm:$0xff]  ;;  %s2176_s6 = smov [#allocation5]  }
 0x50d   :  { %v1424_v11 = vmul.f32 %v3234_v46, %v3234_v46 }
 0x50e   :  { %v1364_v4 = vsub.f32 %v3014_v57, %v1332_v17  ;;  %v1361_v25 = vsub.f32 %v3020_v58, %v1329_v49  ;;  %v3268_v49 = vld [vmem:[%s3375_s7] ss:$0 sm:$0xff]  ;;  %s1734_s7 = sshll.u32 %s2176_s6, 4  ;;  %s1735_s7 = int_to_ptr.vmem [resolvable:$true] %s1734_s7 }
 0x50f   :  { %1483 = vadd.xlane.f32.xlu1 %v1424_v11  ;;  %v1298_v2 = vpop.xlane.xlu0 %1297  ;;  %s2148_s17 = scalar_lea.vmem %s1735_s7, 4096  ;;  %p2153_p6 = scmp.lt.s32.totalorder %s1735_s7, %s1735_s7 }
 0x510   :  { %v1331_v24 = vmul.f32 0.03125, %v1298_v2  ;;  %v3242_v56 = vsel %vm1204_vm1, %v1364_v4, 0.0  ;;  %v3246_v34 = vsel %vm1204_vm1, %v1361_v25, 0.0  ;;  %p2149_p5 = scmp.ne.s32.totalorder %s1735_s7, %s2148_s17  ;;  %p2154_p7 = scmp.lt.s32.totalorder %s2148_s17, %s2148_s17 }
 0x511   :  { %v1428_v29 = vmul.f32 %v3242_v56, %v3242_v56  ;;  %v1425_v43 = vmul.f32 %v3246_v34, %v3246_v34 }
 0x512   :  { %v1363_v57 = vsub.f32 %v3027_v12, %v1331_v24  ;;  %p2155_p8 = por %p2154_p7, %p2153_p6 }
 0x513   :  { %1491 = vadd.xlane.f32.xlu1 %v1428_v29  ;;  %1485 = vadd.xlane.f32.xlu0 %v1425_v43 }
 0x514   :  { %v3255_v58 = vsel %vm1204_vm1, %v1363_v57, 0.0  ;;  %p2156_p9 = pnand %p2155_p8, %p2149_p5 }
 0x515   :  { %v1427_v63 = vmul.f32 %v3255_v58, %v3255_v58 }
 0x517   :  { %1489 = vadd.xlane.f32.xlu0 %v1427_v63 }
 0x52c   :  { %v1488_v13 = vpop.xlane.xlu1 %1487  ;;  %v1430_v39 = vpop.xlane.xlu0 %1429 }
 0x52d   :  { %v1522_v37 = vmul.f32 0.03125, %v1488_v13  ;;  %v1493_v6 = vmul.f32 0.03125, %v1430_v39 }
 0x52f   :  { %v1554_v21 = vadd.f32 1e-05, %v1522_v37  ;;  %v1525_v45 = vadd.f32 1e-05, %v1493_v6 }
 0x530   :  { %v1432_v28 = vpop.xlane.xlu1 %1431 }
 0x531   :  { %2064 = vrsqrt.f32 %v1554_v21  ;;  %v1494_v18 = vmul.f32 0.03125, %v1432_v28 }
 0x532   :  { %2066 = vrsqrt.f32 %v1525_v45 }
 0x533   :  { %v1526_v12 = vadd.f32 1e-05, %v1494_v18 }
 0x534   :  { %v1434_v35 = vpop.xlane.xlu0 %1433 }
 0x535   :  { %2068 = vrsqrt.f32 %v1526_v12  ;;  %v1495_v30 = vmul.f32 0.03125, %v1434_v35 }
 0x537   :  { %v1527_v52 = vadd.f32 1e-05, %v1495_v30 }
 0x538   :  { %v1436_v41 = vpop.xlane.xlu1 %1435 }
 0x539   :  { %2070 = vrsqrt.f32 %v1527_v52  ;;  %v1496_v27 = vmul.f32 0.03125, %v1436_v41 }
 0x53b   :  { %v1528_v47 = vadd.f32 1e-05, %v1496_v27 }
 0x53c   :  { %v1438_v60 = vpop.xlane.xlu0 %1437 }
 0x53d   :  { %2072 = vrsqrt.f32 %v1528_v47  ;;  %v1497_v53 = vmul.f32 0.03125, %v1438_v60 }
 0x53e   :  { %v2065_v38 = vpop.eup %2064 }
 0x53f   :  { %v2067_v55 = vpop.eup %2066  ;;  %v1618_v3 = vmul.f32 %v2065_v38, %v3039_v5  ;;  %v1529_v17 = vadd.f32 1e-05, %v1497_v53 }
 0x540   :  { %v1589_v11 = vmul.f32 %v2067_v55, %v3043_v10  ;;  %v1440_v4 = vpop.xlane.xlu1 %1439 }
 0x541   :  { %v1656_v25 = vmul.f32 %v3262_v62, %v1618_v3  ;;  %2074 = vrsqrt.f32 %v1529_v17  ;;  %v1498_v2 = vmul.f32 0.03125, %v1440_v4 }
 0x542   :  { %v2069_v24 = vpop.eup %2068  ;;  %v1627_v29 = vmul.f32 %v3262_v62, %v1589_v11 }
 0x543   :  { %v1694_v43 = vadd.f32 %v3268_v49, %v1656_v25  ;;  %v1590_v5 = vmul.f32 %v2069_v24, %v3052_v22  ;;  %v1530_v57 = vadd.f32 1e-05, %v1498_v2 }
 0x544   :  { %v1665_v63 = vadd.f32 %v3268_v49, %v1627_v29  ;;  %v1442_v13 = vpop.xlane.xlu0 %1441 }
 0x545   :  { %1726 = vst [vmem:[#allocation5 + $0xe8] sm:$0xff] %v1694_v43  ;;  %v1628_v39 = vmul.f32 %v3262_v62, %v1590_v5  ;;  %2076 = vrsqrt.f32 %v1530_v57  ;;  %v1499_v10 = vmul.f32 0.03125, %v1442_v13 }
 0x546   :  { %v2071_v37 = vpop.eup %2070  ;;  %1697 = vst [vmem:[#allocation5] sm:$0xff] %v1665_v63 }
 0x547   :  { %v1666_v6 = vadd.f32 %v3268_v49, %v1628_v39  ;;  %v1591_v21 = vmul.f32 %v2071_v37, %v3059_v40  ;;  %v1531_v45 = vadd.f32 1e-05, %v1499_v10 }
 0x548   :  { %v1444_v28 = vpop.xlane.xlu1 %1443 }
 0x549   :  { %1698 = vst [vmem:[#allocation5 + $0x8] sm:$0xff] %v1666_v6  ;;  %v1629_v22 = vmul.f32 %v3262_v62, %v1591_v21  ;;  %2078 = vrsqrt.f32 %v1531_v45  ;;  %v1500_v18 = vmul.f32 0.03125, %v1444_v28 }
 0x54a   :  { %v2073_v12 = vpop.eup %2072 }
 0x54b   :  { %v1667_v35 = vadd.f32 %v3268_v49, %v1629_v22  ;;  %v1592_v30 = vmul.f32 %v2073_v12, %v3066_v48  ;;  %v1532_v52 = vadd.f32 1e-05, %v1500_v18 }
 0x54c   :  { %v1446_v41 = vpop.xlane.xlu0 %1445 }
 0x54d   :  { %1699 = vst [vmem:[#allocation5 + $0x10] sm:$0xff] %v1667_v35  ;;  %v1630_v27 = vmul.f32 %v3262_v62, %v1592_v30  ;;  %2080 = vrsqrt.f32 %v1532_v52  ;;  %v1501_v47 = vmul.f32 0.03125, %v1446_v41 }
 0x54e   :  { %v2075_v40 = vpop.eup %2074 }
 0x54f   :  { %v1668_v60 = vadd.f32 %v3268_v49, %v1630_v27  ;;  %v1593_v53 = vmul.f32 %v2075_v40, %v3073_v54  ;;  %v1533_v38 = vadd.f32 1e-05, %v1501_v47 }
 0x550   :  { %v1448_v55 = vpop.xlane.xlu1 %1447 }
 0x551   :  { %1700 = vst [vmem:[#allocation5 + $0x18] sm:$0xff] %v1668_v60  ;;  %v1631_v3 = vmul.f32 %v3262_v62, %v1593_v53  ;;  %2082 = vrsqrt.f32 %v1533_v38  ;;  %v1502_v17 = vmul.f32 0.03125, %v1448_v55 }
 0x552   :  { %v2077_v48 = vpop.eup %2076 }
 0x553   :  { %v1669_v11 = vadd.f32 %v3268_v49, %v1631_v3  ;;  %v1594_v4 = vmul.f32 %v2077_v48, %v3080_v8  ;;  %v1534_v25 = vadd.f32 1e-05, %v1502_v17 }
 0x554   :  { %v1450_v2 = vpop.xlane.xlu0 %1449 }
 0x555   :  { %1701 = vst [vmem:[#allocation5 + $0x20] sm:$0xff] %v1669_v11  ;;  %v1632_v24 = vmul.f32 %v3262_v62, %v1594_v4  ;;  %2084 = vrsqrt.f32 %v1534_v25  ;;  %v1503_v29 = vmul.f32 0.03125, %v1450_v2 }
 0x556   :  { %v2079_v54 = vpop.eup %2078 }
 0x557   :  { %v1670_v43 = vadd.f32 %v3268_v49, %v1632_v24  ;;  %v1595_v5 = vmul.f32 %v2079_v54, %v3087_v0  ;;  %v1535_v57 = vadd.f32 1e-05, %v1503_v29 }
 0x558   :  { %v1452_v63 = vpop.xlane.xlu1 %1451 }
 0x559   :  { %1702 = vst [vmem:[#allocation5 + $0x28] sm:$0xff] %v1670_v43  ;;  %v1633_v13 = vmul.f32 %v3262_v62, %v1595_v5  ;;  %2086 = vrsqrt.f32 %v1535_v57  ;;  %v1504_v39 = vmul.f32 0.03125, %v1452_v63 }
 0x55a   :  { %v2081_v8 = vpop.eup %2080 }
 0x55b   :  { %v1671_v10 = vadd.f32 %v3268_v49, %v1633_v13  ;;  %v1596_v37 = vmul.f32 %v2081_v8, %v3094_v33  ;;  %v1536_v6 = vadd.f32 1e-05, %v1504_v39 }
 0x55c   :  { %v1454_v21 = vpop.xlane.xlu0 %1453 }
 0x55d   :  { %1703 = vst [vmem:[#allocation5 + $0x30] sm:$0xff] %v1671_v10  ;;  %v1634_v45 = vmul.f32 %v3262_v62, %v1596_v37  ;;  %2088 = vrsqrt.f32 %v1536_v6  ;;  %v1505_v28 = vmul.f32 0.03125, %v1454_v21 }
 0x55e   :  { %v2083_v0 = vpop.eup %2082 }
 0x55f   :  { %v1672_v22 = vadd.f32 %v3268_v49, %v1634_v45  ;;  %v1597_v18 = vmul.f32 %v2083_v0, %v3101_v36  ;;  %v1537_v12 = vadd.f32 1e-05, %v1505_v28 }
 0x560   :  { %v1456_v35 = vpop.xlane.xlu1 %1455 }
 0x561   :  { %1704 = vst [vmem:[#allocation5 + $0x38] sm:$0xff] %v1672_v22  ;;  %v1635_v30 = vmul.f32 %v3262_v62, %v1597_v18  ;;  %2090 = vrsqrt.f32 %v1537_v12  ;;  %v1506_v52 = vmul.f32 0.03125, %v1456_v35 }
 0x562   :  { %v2085_v33 = vpop.eup %2084 }
 0x563   :  { %v1673_v41 = vadd.f32 %v3268_v49, %v1635_v30  ;;  %v1598_v27 = vmul.f32 %v2085_v33, %v3108_v32  ;;  %v1538_v47 = vadd.f32 1e-05, %v1506_v52 }
 0x564   :  { %v1458_v40 = vpop.xlane.xlu0 %1457 }
 0x565   :  { %1705 = vst [vmem:[#allocation5 + $0x40] sm:$0xff] %v1673_v41  ;;  %v1636_v60 = vmul.f32 %v3262_v62, %v1598_v27  ;;  %2092 = vrsqrt.f32 %v1538_v47  ;;  %v1507_v53 = vmul.f32 0.03125, %v1458_v40 }
 0x566   :  { %v2087_v36 = vpop.eup %2086 }
 0x567   :  { %v1674_v38 = vadd.f32 %v3268_v49, %v1636_v60  ;;  %v1599_v55 = vmul.f32 %v2087_v36, %v3115_v42  ;;  %v1539_v3 = vadd.f32 1e-05, %v1507_v53 }
 0x568   :  { %v1460_v17 = vpop.xlane.xlu1 %1459 }
 0x569   :  { %1706 = vst [vmem:[#allocation5 + $0x48] sm:$0xff] %v1674_v38  ;;  %v1637_v48 = vmul.f32 %v3262_v62, %v1599_v55  ;;  %2094 = vrsqrt.f32 %v1539_v3  ;;  %v1508_v11 = vmul.f32 0.03125, %v1460_v17 }
 0x56a   :  { %v2089_v32 = vpop.eup %2088 }
 0x56b   :  { %v1675_v4 = vadd.f32 %v3268_v49, %v1637_v48  ;;  %v1600_v25 = vmul.f32 %v2089_v32, %v3122_v61  ;;  %v1540_v2 = vadd.f32 1e-05, %v1508_v11 }
 0x56c   :  { %v1462_v24 = vpop.xlane.xlu0 %1461 }
 0x56d   :  { %1707 = vst [vmem:[#allocation5 + $0x50] sm:$0xff] %v1675_v4  ;;  %v1638_v29 = vmul.f32 %v3262_v62, %v1600_v25  ;;  %2096 = vrsqrt.f32 %v1540_v2  ;;  %v1509_v54 = vmul.f32 0.03125, %v1462_v24 }
 0x56e   :  { %v2091_v42 = vpop.eup %2090 }
 0x56f   :  { %v1676_v43 = vadd.f32 %v3268_v49, %v1638_v29  ;;  %v1601_v5 = vmul.f32 %v2091_v42, %v3129_v7  ;;  %v1541_v57 = vadd.f32 1e-05, %v1509_v54 }
 0x570   :  { %v1464_v63 = vpop.xlane.xlu1 %1463 }
 0x571   :  { %1708 = vst [vmem:[#allocation5 + $0x58] sm:$0xff] %v1676_v43  ;;  %v1639_v13 = vmul.f32 %v3262_v62, %v1601_v5  ;;  %2098 = vrsqrt.f32 %v1541_v57  ;;  %v1510_v39 = vmul.f32 0.03125, %v1464_v63 }
 0x572   :  { %v2093_v61 = vpop.eup %2092 }
 0x573   :  { %v1677_v8 = vadd.f32 %v3268_v49, %v1639_v13  ;;  %v1602_v10 = vmul.f32 %v2093_v61, %v3136_v19  ;;  %v1542_v37 = vadd.f32 1e-05, %v1510_v39 }
 0x574   :  { %v1466_v6 = vpop.xlane.xlu0 %1465 }
 0x575   :  { %1709 = vst [vmem:[#allocation5 + $0x60] sm:$0xff] %v1677_v8  ;;  %v1640_v21 = vmul.f32 %v3262_v62, %v1602_v10  ;;  %2100 = vrsqrt.f32 %v1542_v37  ;;  %v1511_v45 = vmul.f32 0.03125, %v1466_v6 }
 0x576   :  { %v2095_v7 = vpop.eup %2094 }
 0x577   :  { %v1678_v28 = vadd.f32 %v3268_v49, %v1640_v21  ;;  %v1603_v0 = vmul.f32 %v2095_v7, %v3143_v31  ;;  %v1543_v22 = vadd.f32 1e-05, %v1511_v45 }
 0x578   :  { %v1468_v18 = vpop.xlane.xlu1 %1467 }
 0x579   :  { %1710 = vst [vmem:[#allocation5 + $0x68] sm:$0xff] %v1678_v28  ;;  %v1641_v12 = vmul.f32 %v3262_v62, %v1603_v0  ;;  %2102 = vrsqrt.f32 %v1543_v22  ;;  %v1512_v35 = vmul.f32 0.03125, %v1468_v18 }
 0x57a   :  { %v2097_v19 = vpop.eup %2096 }
 0x57b   :  { %v1679_v30 = vadd.f32 %v3268_v49, %v1641_v12  ;;  %v1604_v52 = vmul.f32 %v2097_v19, %v3150_v14  ;;  %v1544_v33 = vadd.f32 1e-05, %v1512_v35 }
 0x57c   :  { %v1470_v41 = vpop.xlane.xlu0 %1469 }
 0x57d   :  { %1711 = vst [vmem:[#allocation5 + $0x70] sm:$0xff] %v1679_v30  ;;  %v1642_v27 = vmul.f32 %v3262_v62, %v1604_v52  ;;  %2104 = vrsqrt.f32 %v1544_v33  ;;  %v1513_v47 = vmul.f32 0.03125, %v1470_v41 }
 0x57e   :  { %v2099_v31 = vpop.eup %2098 }
 0x57f   :  { %v1680_v40 = vadd.f32 %v3268_v49, %v1642_v27  ;;  %v1605_v60 = vmul.f32 %v2099_v31, %v3157_v26  ;;  %v1545_v53 = vadd.f32 1e-05, %v1513_v47 }
 0x580   :  { %v1472_v36 = vpop.xlane.xlu1 %1471 }
 0x581   :  { %1712 = vst [vmem:[#allocation5 + $0x78] sm:$0xff] %v1680_v40  ;;  %v1643_v38 = vmul.f32 %v3262_v62, %v1605_v60  ;;  %2106 = vrsqrt.f32 %v1545_v53  ;;  %v1514_v55 = vmul.f32 0.03125, %v1472_v36 }
 0x582   :  { %v2101_v14 = vpop.eup %2100 }
 0x583   :  { %v1681_v3 = vadd.f32 %v3268_v49, %v1643_v38  ;;  %v1606_v17 = vmul.f32 %v2101_v14, %v3164_v44  ;;  %v1546_v48 = vadd.f32 1e-05, %v1514_v55 }
 0x584   :  { %v1474_v11 = vpop.xlane.xlu0 %1473 }
 0x585   :  { %1713 = vst [vmem:[#allocation5 + $0x80] sm:$0xff] %v1681_v3  ;;  %v1644_v32 = vmul.f32 %v3262_v62, %v1606_v17  ;;  %2108 = vrsqrt.f32 %v1546_v48  ;;  %v1515_v4 = vmul.f32 0.03125, %v1474_v11 }
 0x586   :  { %v2103_v26 = vpop.eup %2102 }
 0x587   :  { %v1682_v25 = vadd.f32 %v3268_v49, %v1644_v32  ;;  %v1607_v2 = vmul.f32 %v2103_v26, %v3171_v50  ;;  %v1547_v24 = vadd.f32 1e-05, %v1515_v4 }
 0x588   :  { %v1476_v29 = vpop.xlane.xlu1 %1475 }
 0x589   :  { %1714 = vst [vmem:[#allocation5 + $0x88] sm:$0xff] %v1682_v25  ;;  %v1645_v54 = vmul.f32 %v3262_v62, %v1607_v2  ;;  %2110 = vrsqrt.f32 %v1547_v24  ;;  %v1516_v42 = vmul.f32 0.03125, %v1476_v29 }
 0x58a   :  { %v2105_v44 = vpop.eup %2104 }
 0x58b   :  { %v1683_v43 = vadd.f32 %v3268_v49, %v1645_v54  ;;  %v1608_v5 = vmul.f32 %v2105_v44, %v3178_v59  ;;  %v1548_v57 = vadd.f32 1e-05, %v1516_v42 }
 0x58c   :  { %v1478_v63 = vpop.xlane.xlu0 %1477 }
 0x58d   :  { %1715 = vst [vmem:[#allocation5 + $0x90] sm:$0xff] %v1683_v43  ;;  %v1646_v13 = vmul.f32 %v3262_v62, %v1608_v5  ;;  %2112 = vrsqrt.f32 %v1548_v57  ;;  %v1517_v39 = vmul.f32 0.03125, %v1478_v63 }
 0x58e   :  { %v2107_v50 = vpop.eup %2106 }
 0x58f   :  { %v1684_v61 = vadd.f32 %v3268_v49, %v1646_v13  ;;  %v1609_v8 = vmul.f32 %v2107_v50, %v3185_v51  ;;  %v1549_v10 = vadd.f32 1e-05, %v1517_v39 }
 0x590   :  { %v1480_v37 = vpop.xlane.xlu1 %1479 }
 0x591   :  { %1716 = vst [vmem:[#allocation5 + $0x98] sm:$0xff] %v1684_v61  ;;  %v1647_v6 = vmul.f32 %v3262_v62, %v1609_v8  ;;  %2114 = vrsqrt.f32 %v1549_v10  ;;  %v1518_v21 = vmul.f32 0.03125, %v1480_v37 }
 0x592   :  { %v2109_v59 = vpop.eup %2108 }
 0x593   :  { %v1685_v45 = vadd.f32 %v3268_v49, %v1647_v6  ;;  %v1610_v7 = vmul.f32 %v2109_v59, %v3192_v20  ;;  %v1550_v28 = vadd.f32 1e-05, %v1518_v21 }
 0x594   :  { %v1482_v0 = vpop.xlane.xlu0 %1481 }
 0x595   :  { %1717 = vst [vmem:[#allocation5 + $0xa0] sm:$0xff] %v1685_v45  ;;  %v1648_v22 = vmul.f32 %v3262_v62, %v1610_v7  ;;  %2116 = vrsqrt.f32 %v1550_v28  ;;  %v1519_v18 = vmul.f32 0.03125, %v1482_v0 }
 0x596   :  { %v2111_v51 = vpop.eup %2110 }
 0x597   :  { %v1686_v12 = vadd.f32 %v3268_v49, %v1648_v22  ;;  %v1611_v35 = vmul.f32 %v2111_v51, %v3199_v15  ;;  %v1551_v19 = vadd.f32 1e-05, %v1519_v18 }
 0x598   :  { %v1484_v30 = vpop.xlane.xlu1 %1483 }
 0x599   :  { %1718 = vst [vmem:[#allocation5 + $0xa8] sm:$0xff] %v1686_v12  ;;  %v1649_v52 = vmul.f32 %v3262_v62, %v1611_v35  ;;  %2118 = vrsqrt.f32 %v1551_v19  ;;  %v1520_v33 = vmul.f32 0.03125, %v1484_v30 }
 0x59a   :  { %v2113_v20 = vpop.eup %2112 }
 0x59b   :  { %v1687_v41 = vadd.f32 %v3268_v49, %v1649_v52  ;;  %v1612_v27 = vmul.f32 %v2113_v20, %v3206_v23  ;;  %v1552_v47 = vadd.f32 1e-05, %v1520_v33 }
 0x59c   :  { %v1492_v31 = vpop.xlane.xlu1 %1491  ;;  %v1486_v40 = vpop.xlane.xlu0 %1485 }
 0x59d   :  { %1719 = vst [vmem:[#allocation5 + $0xb0] sm:$0xff] %v1687_v41  ;;  %v1650_v60 = vmul.f32 %v3262_v62, %v1612_v27  ;;  %2120 = vrsqrt.f32 %v1552_v47  ;;  %v1524_v15 = vmul.f32 0.03125, %v1492_v31  ;;  %v1521_v53 = vmul.f32 0.03125, %v1486_v40 }
 0x59e   :  { %v2115_v36 = vpop.eup %2114 }
 0x59f   :  { %v1688_v38 = vadd.f32 %v3268_v49, %v1650_v60  ;;  %v1613_v55 = vmul.f32 %v2115_v36, %v3213_v1  ;;  %v1556_v14 = vadd.f32 1e-05, %v1524_v15  ;;  %v1553_v3 = vadd.f32 1e-05, %v1521_v53 }
 0x5a0   :  { %v1490_v17 = vpop.xlane.xlu0 %1489 }
 0x5a1   :  { %1720 = vst [vmem:[#allocation5 + $0xb8] sm:$0xff] %v1688_v38  ;;  %v1651_v23 = vmul.f32 %v3262_v62, %v1613_v55  ;;  %2122 = vrsqrt.f32 %v1556_v14  ;;  %v1523_v48 = vmul.f32 0.03125, %v1490_v17 }
 0x5a2   :  { %v2117_v11 = vpop.eup %2116  ;;  %2124 = vrsqrt.f32 %v1553_v3 }
 0x5a3   :  { %v1689_v32 = vadd.f32 %v3268_v49, %v1651_v23  ;;  %v1614_v4 = vmul.f32 %v2117_v11, %v3220_v16  ;;  %v1555_v26 = vadd.f32 1e-05, %v1523_v48 }
 0x5a5   :  { %1721 = vst [vmem:[#allocation5 + $0xc0] sm:$0xff] %v1689_v32  ;;  %v1652_v25 = vmul.f32 %v3262_v62, %v1614_v4  ;;  %2126 = vrsqrt.f32 %v1555_v26 }
 0x5a6   :  { %v2119_v1 = vpop.eup %2118 }
 0x5a7   :  { %v1690_v2 = vadd.f32 %v3268_v49, %v1652_v25  ;;  %v1615_v24 = vmul.f32 %v2119_v1, %v3227_v9 }
 0x5a9   :  { %1722 = vst [vmem:[#allocation5 + $0xc8] sm:$0xff] %v1690_v2  ;;  %v1653_v29 = vmul.f32 %v3262_v62, %v1615_v24 }
 0x5aa   :  { %v2121_v54 = vpop.eup %2120 }
 0x5ab   :  { %v1691_v42 = vadd.f32 %v3268_v49, %v1653_v29  ;;  %v1616_v44 = vmul.f32 %v2121_v54, %v3234_v46 }
 0x5ad   :  { %1723 = vst [vmem:[#allocation5 + $0xd0] sm:$0xff] %v1691_v42  ;;  %v1654_v16 = vmul.f32 %v3262_v62, %v1616_v44 }
 0x5ae   :  { %v2123_v43 = vpop.eup %2122 }
 0x5af   :  { %v2125_v5 = vpop.eup %2124  ;;  %v1692_v57 = vadd.f32 %v3268_v49, %v1654_v16  ;;  %v1620_v63 = vmul.f32 %v2123_v43, %v3242_v56 }
 0x5b0   :  { %v1617_v13 = vmul.f32 %v2125_v5, %v3246_v34 }
 0x5b1   :  { %1724 = vst [vmem:[#allocation5 + $0xd8] sm:$0xff] %v1692_v57  ;;  %v1658_v9 = vmul.f32 %v3262_v62, %v1620_v63 }
 0x5b2   :  { %v2127_v39 = vpop.eup %2126  ;;  %v1655_v50 = vmul.f32 %v3262_v62, %v1617_v13 }
 0x5b3   :  { %v1696_v61 = vadd.f32 %v3268_v49, %v1658_v9  ;;  %v1619_v46 = vmul.f32 %v2127_v39, %v3255_v58 }
 0x5b4   :  { %v1693_v8 = vadd.f32 %v3268_v49, %v1655_v50 }
 0x5b5   :  { %1728 = vst [vmem:[#allocation5 + $0xf8] sm:$0xff] %v1696_v61  ;;  %v1657_v10 = vmul.f32 %v3262_v62, %v1619_v46 }
 0x5b6   :  { %1725 = vst [vmem:[#allocation5 + $0xe0] sm:$0xff] %v1693_v8 }
 0x5b7   :  { %v1695_v56 = vadd.f32 %v3268_v49, %v1657_v10 }
 0x5b9   :  { %1727 = vst [vmem:[#allocation5 + $0xf0] sm:$0xff] %v1695_v56 }
 0x5ba   :  { %2159 = shalt.err (!%p2156_p9)
}
 0x5bb   :  { %s2177_s18 = smov 128   ;;  %s2178_s0 = smov 8  }
 0x5bc   :  { %1740 = dma.vmem_to_hbm [thread:$0]  %s1735_s7, 4096, %s3376_s8, [#allocation4], %s2177_s18, %s2177_s18, %s2178_s0  }
 0x5bd   :  { %2170 = dma.done.wait [#allocation4], 4096  }
 0x5be   :  { %2171 = vsyncadd [#allocation4], 4294963200 }
 0x5bf   :  { %1744 = vsyncpa [#allocation3], 1 }
 0x5c0   :  { %1745 = vsyncpa [#allocation4], 1 }

</bundles_post_ra>
